<compile_context>
chip_gen: v6e
topology: v6e:2x2x1
jax: 0.10.0
libtpu: 0.0.40
codegen_flags: <defaults>
</compile_context>

<pallas_src>
import math

import jax
import jax.numpy as jnp
from jax.experimental import pallas as pl
from jax.experimental.pallas import tpu as pltpu

# ----------------------------- model config --------------------------------
VOCAB_SIZE = 100
MAX_POS = 32
HIDDEN = 32
NUM_LAYERS = 2
NUM_HEADS = 2
HEAD_DIM = HIDDEN // NUM_HEADS
INTERMEDIATE = 64
NUM_LABELS = 3
LN_EPS = 1e-12

BATCH = 2
SEQ = 8


def _vmem():
    # whole-array block resident in VMEM (all shapes here are tiny)
    return pl.BlockSpec(memory_space=pltpu.MemorySpace.VMEM)


# ------------------------------- fused kernel --------------------------------
def _gelu(x):
    # TODO(synk): HF BERT uses exact erf-GELU; tanh approximation used here for
    # robust Mosaic lowering (numerically ~1e-3 close).
    return jax.nn.gelu(x, approximate=True)


def _bert_fused_kernel(
    emb_ref, mask_ref, emb_g_ref, emb_b_ref,
    wqkv_ref, bqkv_ref, wo_ref, bo_ref, ln1g_ref, ln1b_ref,
    wi_ref, bi_ref, wo2_ref, bo2_ref, ln2g_ref, ln2b_ref,
    pw_ref, pb_ref, cw_ref, cb_ref,
    out_ref, ctx_ref,
):
    B, S = mask_ref.shape
    scale = 1.0 / math.sqrt(HEAD_DIM)

    def layernorm(x, g, b):
        mu = jnp.mean(x, axis=-1, keepdims=True)
        xc = x - mu
        var = jnp.mean(xc * xc, axis=-1, keepdims=True)
        return xc * jax.lax.rsqrt(var + LN_EPS) * g + b

    # ---- embedding LayerNorm (no fake zero residual) ----
    x = layernorm(emb_ref[...], emb_g_ref[...], emb_b_ref[...])        # [B*S, H]

    # ---- additive attention mask built in-kernel from the raw [B, S] mask ----
    ext = (1.0 - mask_ref[...]) * -10000.0                             # [B, S]

    # ---- transformer layers (static Python loop, weights indexed per layer) ----
    for li in range(NUM_LAYERS):
        # fused QKV projection: one matmul, lane-dense [B*S, 3H] output
        qkv = jnp.dot(x, wqkv_ref[li], preferred_element_type=jnp.float32) + bqkv_ref[li]
        q = qkv[:, 0:HIDDEN] * scale
        k = qkv[:, HIDDEN:2 * HIDDEN]
        v = qkv[:, 2 * HIDDEN:3 * HIDDEN]

        # per-(batch, head) attention; context written into VMEM scratch
        for b in range(B):
            ext_b = ext[b:b + 1, :]                                    # [1, S]
            r0 = b * S
            for hh in range(NUM_HEADS):
                c0 = hh * HEAD_DIM
                q_bh = q[r0:r0 + S, c0:c0 + HEAD_DIM]                  # [S, hd]
                k_bh = k[r0:r0 + S, c0:c0 + HEAD_DIM]
                v_bh = v[r0:r0 + S, c0:c0 + HEAD_DIM]
                s = jax.lax.dot_general(
                    q_bh, k_bh, (((1,), (1,)), ((), ())),
                    preferred_element_type=jnp.float32)                # [S, S]
                s = s + ext_b
                s = s - jnp.max(s, axis=-1, keepdims=True)
                p = jnp.exp(s)
                p = p * pl.reciprocal(jnp.sum(p, axis=-1, keepdims=True), approx=True)
                ctx_bh = jnp.dot(p, v_bh, preferred_element_type=jnp.float32)
                ctx_ref[pl.ds(r0, S), pl.ds(c0, HEAD_DIM)] = ctx_bh

        ctx = ctx_ref[...]                                             # [B*S, H]
        attn_out = jnp.dot(ctx, wo_ref[li], preferred_element_type=jnp.float32) + bo_ref[li]
        x = layernorm(attn_out + x, ln1g_ref[li], ln1b_ref[li])

        inter = jnp.dot(x, wi_ref[li], preferred_element_type=jnp.float32) + bi_ref[li]
        inter = _gelu(inter)
        ffn = jnp.dot(inter, wo2_ref[li], preferred_element_type=jnp.float32) + bo2_ref[li]
        x = layernorm(ffn + x, ln2g_ref[li], ln2b_ref[li])

    # ---- pooler (dense + tanh) and classifier ----
    # Computed for all B*S rows (trivial extra FLOPs at this size, keeps the
    # kernel free of row-gather ops); the [CLS] rows are selected outside.
    pooled = jnp.tanh(jnp.dot(x, pw_ref[...], preferred_element_type=jnp.float32) + pb_ref[...])
    logits = jnp.dot(pooled, cw_ref[...], preferred_element_type=jnp.float32) + cb_ref[...]
    out_ref[...] = logits.astype(out_ref.dtype)


# ----------------------------- parameter init -------------------------------
def init_params(key):
    def dense(k, fan_in, fan_out):
        kw, kb = jax.random.split(k)
        w = 0.02 * jax.random.normal(kw, (fan_in, fan_out), jnp.float32)
        b = 0.02 * jax.random.normal(kb, (fan_out,), jnp.float32)
        return w, b

    keys = jax.random.split(key, 5 + NUM_LAYERS)
    params = {
        "word_emb": 0.02 * jax.random.normal(keys[0], (VOCAB_SIZE, HIDDEN), jnp.float32),
        "pos_emb": 0.02 * jax.random.normal(keys[1], (MAX_POS, HIDDEN), jnp.float32),
        "type_emb": 0.02 * jax.random.normal(keys[2], (2, HIDDEN), jnp.float32),
        "emb_ln_g": jnp.ones((1, HIDDEN), jnp.float32),
        "emb_ln_b": jnp.zeros((1, HIDDEN), jnp.float32),
    }

    wqkv_l, bqkv_l, wo_l, bo_l, wi_l, bi_l, wo2_l, bo2_l = ([] for _ in range(8))
    for li in range(NUM_LAYERS):
        lk = jax.random.split(keys[3 + li], 6)
        wq, bq = dense(lk[0], HIDDEN, HIDDEN)
        wk, bk = dense(lk[1], HIDDEN, HIDDEN)
        wv, bv = dense(lk[2], HIDDEN, HIDDEN)
        wo, bo = dense(lk[3], HIDDEN, HIDDEN)
        wi, bi = dense(lk[4], HIDDEN, INTERMEDIATE)
        wo2, bo2 = dense(lk[5], INTERMEDIATE, HIDDEN)
        wqkv_l.append(jnp.concatenate([wq, wk, wv], axis=1))           # [H, 3H]
        bqkv_l.append(jnp.concatenate([bq, bk, bv])[None, :])          # [1, 3H]
        wo_l.append(wo)
        bo_l.append(bo[None, :])
        wi_l.append(wi)
        bi_l.append(bi[None, :])
        wo2_l.append(wo2)
        bo2_l.append(bo2[None, :])

    params.update({
        "wqkv": jnp.stack(wqkv_l), "bqkv": jnp.stack(bqkv_l),
        "wo": jnp.stack(wo_l), "bo": jnp.stack(bo_l),
        "ln1_g": jnp.ones((NUM_LAYERS, 1, HIDDEN), jnp.float32),
        "ln1_b": jnp.zeros((NUM_LAYERS, 1, HIDDEN), jnp.float32),
        "wi": jnp.stack(wi_l), "bi": jnp.stack(bi_l),
        "wo2": jnp.stack(wo2_l), "bo2": jnp.stack(bo2_l),
        "ln2_g": jnp.ones((NUM_LAYERS, 1, HIDDEN), jnp.float32),
        "ln2_b": jnp.zeros((NUM_LAYERS, 1, HIDDEN), jnp.float32),
    })

    pw, pb = dense(keys[3 + NUM_LAYERS], HIDDEN, HIDDEN)
    cw, cb = dense(keys[4 + NUM_LAYERS], HIDDEN, NUM_LABELS)
    params["pooler_w"], params["pooler_b"] = pw, pb[None, :]
    params["cls_w"], params["cls_b"] = cw, cb[None, :]
    return params


# ------------------------------ forward pass ---------------------------------
@jax.jit
def bert_for_sequence_classification(params, input_ids, attention_mask):
    B, S = input_ids.shape
    M = B * S

    # --- embeddings: gathers stay in XLA glue; everything after runs in the kernel ---
    # TODO(synk): embedding table gather is left to XLA (a Pallas version needs DMA gather).
    we = params["word_emb"][input_ids]                      # [B, S, H]
    pe = params["pos_emb"][jnp.arange(S)][None, :, :]       # [1, S, H]
    te = params["type_emb"][0][None, None, :]               # [1, 1, H] (token_type_ids = 0)
    emb = (we + pe + te).reshape(M, HIDDEN)
    mask_f = attention_mask.astype(jnp.float32)             # [B, S]

    operands = (
        emb, mask_f, params["emb_ln_g"], params["emb_ln_b"],
        params["wqkv"], params["bqkv"], params["wo"], params["bo"],
        params["ln1_g"], params["ln1_b"],
        params["wi"], params["bi"], params["wo2"], params["bo2"],
        params["ln2_g"], params["ln2_b"],
        params["pooler_w"], params["pooler_b"],
        params["cls_w"], params["cls_b"],
    )

    # --- advisory cost estimate for the fused custom call ---
    flops_layer = (2 * M * HIDDEN * 3 * HIDDEN                       # fused QKV
                   + B * NUM_HEADS * 4 * S * S * HEAD_DIM            # scores + ctx
                   + 2 * M * HIDDEN * HIDDEN                         # attn output proj
                   + 4 * M * HIDDEN * INTERMEDIATE)                  # FFN (two matmuls)
    flops = (NUM_LAYERS * flops_layer
             + 2 * M * HIDDEN * HIDDEN                               # pooler
             + 2 * M * HIDDEN * NUM_LABELS)                          # classifier
    transcendentals = (NUM_LAYERS * (B * NUM_HEADS * S * S + M * INTERMEDIATE)
                       + M * HIDDEN)
    bytes_accessed = sum(int(a.size) * 4 for a in operands) + M * NUM_LABELS * 4

    logits_all = pl.pallas_call(
        _bert_fused_kernel,
        out_shape=jax.ShapeDtypeStruct((M, NUM_LABELS), jnp.float32),
        in_specs=[_vmem()] * len(operands),
        out_specs=_vmem(),
        scratch_shapes=[pltpu.VMEM((M, HIDDEN), jnp.float32)],
        cost_estimate=pl.CostEstimate(
            flops=flops,
            transcendentals=transcendentals,
            bytes_accessed=bytes_accessed),
    )(*operands)

    # Select the [CLS] (position 0) logits per batch; dropout(p=0.1) is identity
    # at inference time.
    return logits_all.reshape(B, S, NUM_LABELS)[:, 0, :]


# ---------------------------------- main --------------------------------------
if __name__ == "__main__":
    key = jax.random.PRNGKey(0)
    k_params, k_ids = jax.random.split(key)

    params = init_params(k_params)
    input_ids = jax.random.randint(k_ids, (BATCH, SEQ), 0, VOCAB_SIZE, dtype=jnp.int32)
    attention_mask = jnp.ones((BATCH, SEQ), dtype=jnp.int32)
    attention_mask = attention_mask.at[1, SEQ - 2:].set(0)  # pad tail of 2nd example

    logits = bert_for_sequence_classification(params, input_ids, attention_mask)
    logits = jax.block_until_ready(logits)

    assert logits.shape == (BATCH, NUM_LABELS)
    assert bool(jnp.all(jnp.isfinite(logits)))
    print("KERNEL_OK")
</pallas_src>

<mosaic_0001>
module attributes {stable_mosaic.version = 11 : i64} {
  func.func @_bert_fused_kernel(%arg0: memref<16x32xf32, #tpu.memory_space<vmem>>, %arg1: memref<2x8xf32, #tpu.memory_space<vmem>>, %arg2: memref<1x32xf32, #tpu.memory_space<vmem>>, %arg3: memref<1x32xf32, #tpu.memory_space<vmem>>, %arg4: memref<2x32x96xf32, #tpu.memory_space<vmem>>, %arg5: memref<2x1x96xf32, #tpu.memory_space<vmem>>, %arg6: memref<2x32x32xf32, #tpu.memory_space<vmem>>, %arg7: memref<2x1x32xf32, #tpu.memory_space<vmem>>, %arg8: memref<2x1x32xf32, #tpu.memory_space<vmem>>, %arg9: memref<2x1x32xf32, #tpu.memory_space<vmem>>, %arg10: memref<2x32x64xf32, #tpu.memory_space<vmem>>, %arg11: memref<2x1x64xf32, #tpu.memory_space<vmem>>, %arg12: memref<2x64x32xf32, #tpu.memory_space<vmem>>, %arg13: memref<2x1x32xf32, #tpu.memory_space<vmem>>, %arg14: memref<2x1x32xf32, #tpu.memory_space<vmem>>, %arg15: memref<2x1x32xf32, #tpu.memory_space<vmem>>, %arg16: memref<32x32xf32, #tpu.memory_space<vmem>>, %arg17: memref<1x32xf32, #tpu.memory_space<vmem>>, %arg18: memref<32x3xf32, #tpu.memory_space<vmem>>, %arg19: memref<1x3xf32, #tpu.memory_space<vmem>>, %arg20: memref<16x3xf32, #tpu.memory_space<vmem>>, %arg21: memref<16x32xf32, #tpu.memory_space<vmem>>) attributes {dimension_semantics = [], scalar_prefetch = 0 : i64, scratch_operands = 1 : i64, tpu.core_type = #tpu.core_type<tc>} {
    %c0 = arith.constant 0 : index
    %c0_0 = arith.constant 0 : index
    %0 = vector.load %arg0[%c0, %c0_0] : memref<16x32xf32, #tpu.memory_space<vmem>>, vector<16x32xf32>
    %c0_1 = arith.constant 0 : index
    %c0_2 = arith.constant 0 : index
    %1 = vector.load %arg2[%c0_1, %c0_2] : memref<1x32xf32, #tpu.memory_space<vmem>>, vector<1x32xf32>
    %c0_3 = arith.constant 0 : index
    %c0_4 = arith.constant 0 : index
    %2 = vector.load %arg3[%c0_3, %c0_4] : memref<1x32xf32, #tpu.memory_space<vmem>>, vector<1x32xf32>
    %cst = arith.constant dense<0.000000e+00> : vector<16xf32>
    %3 = vector.multi_reduction <add>, %0, %cst [1] : vector<16x32xf32> to vector<16xf32>
    %4 = vector.shape_cast %3 : vector<16xf32> to vector<16x1xf32>
    %cst_5 = arith.constant 3.200000e+01 : f32
    %5 = vector.broadcast %cst_5 : f32 to vector<16x1xf32>
    %6 = arith.divf %4, %5 : vector<16x1xf32>
    %7 = vector.broadcast %6 : vector<16x1xf32> to vector<16x32xf32>
    %8 = arith.subf %0, %7 : vector<16x32xf32>
    %9 = arith.mulf %8, %8 : vector<16x32xf32>
    %cst_6 = arith.constant dense<0.000000e+00> : vector<16xf32>
    %10 = vector.multi_reduction <add>, %9, %cst_6 [1] : vector<16x32xf32> to vector<16xf32>
    %11 = vector.shape_cast %10 : vector<16xf32> to vector<16x1xf32>
    %cst_7 = arith.constant 3.200000e+01 : f32
    %12 = vector.broadcast %cst_7 : f32 to vector<16x1xf32>
    %13 = arith.divf %11, %12 : vector<16x1xf32>
    %cst_8 = arith.constant 9.99999996E-13 : f32
    %14 = vector.broadcast %cst_8 : f32 to vector<16x1xf32>
    %15 = arith.addf %13, %14 : vector<16x1xf32>
    %16 = math.rsqrt %15 : vector<16x1xf32>
    %17 = vector.broadcast %16 : vector<16x1xf32> to vector<16x32xf32>
    %18 = arith.mulf %8, %17 : vector<16x32xf32>
    %19 = vector.broadcast %1 : vector<1x32xf32> to vector<16x32xf32>
    %20 = arith.mulf %18, %19 : vector<16x32xf32>
    %21 = vector.broadcast %2 : vector<1x32xf32> to vector<16x32xf32>
    %22 = arith.addf %20, %21 : vector<16x32xf32>
    %c0_9 = arith.constant 0 : index
    %c0_10 = arith.constant 0 : index
    %23 = vector.load %arg1[%c0_9, %c0_10] : memref<2x8xf32, #tpu.memory_space<vmem>>, vector<2x8xf32>
    %cst_11 = arith.constant 1.000000e+00 : f32
    %24 = vector.broadcast %cst_11 : f32 to vector<2x8xf32>
    %25 = arith.subf %24, %23 : vector<2x8xf32>
    %cst_12 = arith.constant -1.000000e+04 : f32
    %26 = vector.broadcast %cst_12 : f32 to vector<2x8xf32>
    %27 = arith.mulf %25, %26 : vector<2x8xf32>
    %c0_13 = arith.constant 0 : index
    %c0_14 = arith.constant 0 : index
    %c0_15 = arith.constant 0 : index
    %28 = vector.load %arg4[%c0_13, %c0_14, %c0_15] : memref<2x32x96xf32, #tpu.memory_space<vmem>>, vector<1x32x96xf32>
    %29 = vector.shape_cast %28 : vector<1x32x96xf32> to vector<32x96xf32>
    %cst_16 = arith.constant dense<0.000000e+00> : vector<16x96xf32>
    %30 = tpu.matmul %22, %29, %cst_16 {dimension_numbers = #tpu.dot_dimension_numbers<[1], [0], [0], [1], [0, 0, 1, 1], [], []>} : vector<16x32xf32>, vector<32x96xf32>, vector<16x96xf32> -> vector<16x96xf32>
    %c0_17 = arith.constant 0 : index
    %c0_18 = arith.constant 0 : index
    %c0_19 = arith.constant 0 : index
    %31 = vector.load %arg5[%c0_17, %c0_18, %c0_19] : memref<2x1x96xf32, #tpu.memory_space<vmem>>, vector<1x1x96xf32>
    %32 = vector.shape_cast %31 : vector<1x1x96xf32> to vector<1x96xf32>
    %33 = vector.broadcast %32 : vector<1x96xf32> to vector<16x96xf32>
    %34 = arith.addf %30, %33 : vector<16x96xf32>
    %35 = vector.extract_strided_slice %34 {offsets = [0, 0], sizes = [16, 32], strides = [1, 1]} : vector<16x96xf32> to vector<16x32xf32>
    %cst_20 = arith.constant 2.500000e-01 : f32
    %36 = vector.broadcast %cst_20 : f32 to vector<16x32xf32>
    %37 = arith.mulf %35, %36 : vector<16x32xf32>
    %38 = vector.extract_strided_slice %34 {offsets = [0, 32], sizes = [16, 32], strides = [1, 1]} : vector<16x96xf32> to vector<16x32xf32>
    %39 = vector.extract_strided_slice %34 {offsets = [0, 64], sizes = [16, 32], strides = [1, 1]} : vector<16x96xf32> to vector<16x32xf32>
    %40 = vector.extract_strided_slice %27 {offsets = [0, 0], sizes = [1, 8], strides = [1, 1]} : vector<2x8xf32> to vector<1x8xf32>
    %41 = vector.extract_strided_slice %37 {offsets = [0, 0], sizes = [8, 16], strides = [1, 1]} : vector<16x32xf32> to vector<8x16xf32>
    %42 = vector.extract_strided_slice %38 {offsets = [0, 0], sizes = [8, 16], strides = [1, 1]} : vector<16x32xf32> to vector<8x16xf32>
    %43 = vector.extract_strided_slice %39 {offsets = [0, 0], sizes = [8, 16], strides = [1, 1]} : vector<16x32xf32> to vector<8x16xf32>
    %cst_21 = arith.constant dense<0.000000e+00> : vector<8x8xf32>
    %44 = tpu.matmul %41, %42, %cst_21 {dimension_numbers = #tpu.dot_dimension_numbers<[1], [1], [0], [0], [0, 0, 1, 0], [], []>} : vector<8x16xf32>, vector<8x16xf32>, vector<8x8xf32> -> vector<8x8xf32>
    %45 = vector.broadcast %40 : vector<1x8xf32> to vector<8x8xf32>
    %46 = arith.addf %44, %45 : vector<8x8xf32>
    %cst_22 = arith.constant dense<0xFF800000> : vector<8xf32>
    %47 = vector.multi_reduction <maximumf>, %46, %cst_22 [1] : vector<8x8xf32> to vector<8xf32>
    %48 = vector.shape_cast %47 : vector<8xf32> to vector<8x1xf32>
    %49 = vector.broadcast %48 : vector<8x1xf32> to vector<8x8xf32>
    %50 = arith.subf %46, %49 : vector<8x8xf32>
    %51 = math.exp %50 : vector<8x8xf32>
    %cst_23 = arith.constant dense<0.000000e+00> : vector<8xf32>
    %52 = vector.multi_reduction <add>, %51, %cst_23 [1] : vector<8x8xf32> to vector<8xf32>
    %53 = vector.shape_cast %52 : vector<8xf32> to vector<8x1xf32>
    %54 = tpu.reciprocal %53 {approx = true} : vector<8x1xf32> -> vector<8x1xf32>
    %55 = vector.broadcast %54 : vector<8x1xf32> to vector<8x8xf32>
    %56 = arith.mulf %51, %55 : vector<8x8xf32>
    %cst_24 = arith.constant dense<0.000000e+00> : vector<8x16xf32>
    %57 = tpu.matmul %56, %43, %cst_24 {dimension_numbers = #tpu.dot_dimension_numbers<[1], [0], [0], [1], [0, 0, 1, 1], [], []>} : vector<8x8xf32>, vector<8x16xf32>, vector<8x16xf32> -> vector<8x16xf32>
    %c0_25 = arith.constant 0 : index
    %c0_26 = arith.constant 0 : index
    %58 = vector.load %arg21[%c0_25, %c0_26] : memref<16x32xf32, #tpu.memory_space<vmem>>, vector<8x16xf32>
    tpu.vector_store %arg21[%c0_25, %c0_26], %57 {strides = array<i32>} : memref<16x32xf32, #tpu.memory_space<vmem>>, vector<8x16xf32>,
    %59 = vector.extract_strided_slice %37 {offsets = [0, 16], sizes = [8, 16], strides = [1, 1]} : vector<16x32xf32> to vector<8x16xf32>
    %60 = vector.extract_strided_slice %38 {offsets = [0, 16], sizes = [8, 16], strides = [1, 1]} : vector<16x32xf32> to vector<8x16xf32>
    %61 = vector.extract_strided_slice %39 {offsets = [0, 16], sizes = [8, 16], strides = [1, 1]} : vector<16x32xf32> to vector<8x16xf32>
    %cst_27 = arith.constant dense<0.000000e+00> : vector<8x8xf32>
    %62 = tpu.matmul %59, %60, %cst_27 {dimension_numbers = #tpu.dot_dimension_numbers<[1], [1], [0], [0], [0, 0, 1, 0], [], []>} : vector<8x16xf32>, vector<8x16xf32>, vector<8x8xf32> -> vector<8x8xf32>
    %63 = vector.broadcast %40 : vector<1x8xf32> to vector<8x8xf32>
    %64 = arith.addf %62, %63 : vector<8x8xf32>
    %cst_28 = arith.constant dense<0xFF800000> : vector<8xf32>
    %65 = vector.multi_reduction <maximumf>, %64, %cst_28 [1] : vector<8x8xf32> to vector<8xf32>
    %66 = vector.shape_cast %65 : vector<8xf32> to vector<8x1xf32>
    %67 = vector.broadcast %66 : vector<8x1xf32> to vector<8x8xf32>
    %68 = arith.subf %64, %67 : vector<8x8xf32>
    %69 = math.exp %68 : vector<8x8xf32>
    %cst_29 = arith.constant dense<0.000000e+00> : vector<8xf32>
    %70 = vector.multi_reduction <add>, %69, %cst_29 [1] : vector<8x8xf32> to vector<8xf32>
    %71 = vector.shape_cast %70 : vector<8xf32> to vector<8x1xf32>
    %72 = tpu.reciprocal %71 {approx = true} : vector<8x1xf32> -> vector<8x1xf32>
    %73 = vector.broadcast %72 : vector<8x1xf32> to vector<8x8xf32>
    %74 = arith.mulf %69, %73 : vector<8x8xf32>
    %cst_30 = arith.constant dense<0.000000e+00> : vector<8x16xf32>
    %75 = tpu.matmul %74, %61, %cst_30 {dimension_numbers = #tpu.dot_dimension_numbers<[1], [0], [0], [1], [0, 0, 1, 1], [], []>} : vector<8x8xf32>, vector<8x16xf32>, vector<8x16xf32> -> vector<8x16xf32>
    %c0_31 = arith.constant 0 : index
    %c16 = arith.constant 16 : index
    %76 = vector.load %arg21[%c0_31, %c16] : memref<16x32xf32, #tpu.memory_space<vmem>>, vector<8x16xf32>
    tpu.vector_store %arg21[%c0_31, %c16], %75 {strides = array<i32>} : memref<16x32xf32, #tpu.memory_space<vmem>>, vector<8x16xf32>,
    %77 = vector.extract_strided_slice %27 {offsets = [1, 0], sizes = [1, 8], strides = [1, 1]} : vector<2x8xf32> to vector<1x8xf32>
    %78 = vector.extract_strided_slice %37 {offsets = [8, 0], sizes = [8, 16], strides = [1, 1]} : vector<16x32xf32> to vector<8x16xf32>
    %79 = vector.extract_strided_slice %38 {offsets = [8, 0], sizes = [8, 16], strides = [1, 1]} : vector<16x32xf32> to vector<8x16xf32>
    %80 = vector.extract_strided_slice %39 {offsets = [8, 0], sizes = [8, 16], strides = [1, 1]} : vector<16x32xf32> to vector<8x16xf32>
    %cst_32 = arith.constant dense<0.000000e+00> : vector<8x8xf32>
    %81 = tpu.matmul %78, %79, %cst_32 {dimension_numbers = #tpu.dot_dimension_numbers<[1], [1], [0], [0], [0, 0, 1, 0], [], []>} : vector<8x16xf32>, vector<8x16xf32>, vector<8x8xf32> -> vector<8x8xf32>
    %82 = vector.broadcast %77 : vector<1x8xf32> to vector<8x8xf32>
    %83 = arith.addf %81, %82 : vector<8x8xf32>
    %cst_33 = arith.constant dense<0xFF800000> : vector<8xf32>
    %84 = vector.multi_reduction <maximumf>, %83, %cst_33 [1] : vector<8x8xf32> to vector<8xf32>
    %85 = vector.shape_cast %84 : vector<8xf32> to vector<8x1xf32>
    %86 = vector.broadcast %85 : vector<8x1xf32> to vector<8x8xf32>
    %87 = arith.subf %83, %86 : vector<8x8xf32>
    %88 = math.exp %87 : vector<8x8xf32>
    %cst_34 = arith.constant dense<0.000000e+00> : vector<8xf32>
    %89 = vector.multi_reduction <add>, %88, %cst_34 [1] : vector<8x8xf32> to vector<8xf32>
    %90 = vector.shape_cast %89 : vector<8xf32> to vector<8x1xf32>
    %91 = tpu.reciprocal %90 {approx = true} : vector<8x1xf32> -> vector<8x1xf32>
    %92 = vector.broadcast %91 : vector<8x1xf32> to vector<8x8xf32>
    %93 = arith.mulf %88, %92 : vector<8x8xf32>
    %cst_35 = arith.constant dense<0.000000e+00> : vector<8x16xf32>
    %94 = tpu.matmul %93, %80, %cst_35 {dimension_numbers = #tpu.dot_dimension_numbers<[1], [0], [0], [1], [0, 0, 1, 1], [], []>} : vector<8x8xf32>, vector<8x16xf32>, vector<8x16xf32> -> vector<8x16xf32>
    %c8 = arith.constant 8 : index
    %c0_36 = arith.constant 0 : index
    %95 = vector.load %arg21[%c8, %c0_36] : memref<16x32xf32, #tpu.memory_space<vmem>>, vector<8x16xf32>
    tpu.vector_store %arg21[%c8, %c0_36], %94 {strides = array<i32>} : memref<16x32xf32, #tpu.memory_space<vmem>>, vector<8x16xf32>,
    %96 = vector.extract_strided_slice %37 {offsets = [8, 16], sizes = [8, 16], strides = [1, 1]} : vector<16x32xf32> to vector<8x16xf32>
    %97 = vector.extract_strided_slice %38 {offsets = [8, 16], sizes = [8, 16], strides = [1, 1]} : vector<16x32xf32> to vector<8x16xf32>
    %98 = vector.extract_strided_slice %39 {offsets = [8, 16], sizes = [8, 16], strides = [1, 1]} : vector<16x32xf32> to vector<8x16xf32>
    %cst_37 = arith.constant dense<0.000000e+00> : vector<8x8xf32>
    %99 = tpu.matmul %96, %97, %cst_37 {dimension_numbers = #tpu.dot_dimension_numbers<[1], [1], [0], [0], [0, 0, 1, 0], [], []>} : vector<8x16xf32>, vector<8x16xf32>, vector<8x8xf32> -> vector<8x8xf32>
    %100 = vector.broadcast %77 : vector<1x8xf32> to vector<8x8xf32>
    %101 = arith.addf %99, %100 : vector<8x8xf32>
    %cst_38 = arith.constant dense<0xFF800000> : vector<8xf32>
    %102 = vector.multi_reduction <maximumf>, %101, %cst_38 [1] : vector<8x8xf32> to vector<8xf32>
    %103 = vector.shape_cast %102 : vector<8xf32> to vector<8x1xf32>
    %104 = vector.broadcast %103 : vector<8x1xf32> to vector<8x8xf32>
    %105 = arith.subf %101, %104 : vector<8x8xf32>
    %106 = math.exp %105 : vector<8x8xf32>
    %cst_39 = arith.constant dense<0.000000e+00> : vector<8xf32>
    %107 = vector.multi_reduction <add>, %106, %cst_39 [1] : vector<8x8xf32> to vector<8xf32>
    %108 = vector.shape_cast %107 : vector<8xf32> to vector<8x1xf32>
    %109 = tpu.reciprocal %108 {approx = true} : vector<8x1xf32> -> vector<8x1xf32>
    %110 = vector.broadcast %109 : vector<8x1xf32> to vector<8x8xf32>
    %111 = arith.mulf %106, %110 : vector<8x8xf32>
    %cst_40 = arith.constant dense<0.000000e+00> : vector<8x16xf32>
    %112 = tpu.matmul %111, %98, %cst_40 {dimension_numbers = #tpu.dot_dimension_numbers<[1], [0], [0], [1], [0, 0, 1, 1], [], []>} : vector<8x8xf32>, vector<8x16xf32>, vector<8x16xf32> -> vector<8x16xf32>
    %c8_41 = arith.constant 8 : index
    %c16_42 = arith.constant 16 : index
    %113 = vector.load %arg21[%c8_41, %c16_42] : memref<16x32xf32, #tpu.memory_space<vmem>>, vector<8x16xf32>
    tpu.vector_store %arg21[%c8_41, %c16_42], %112 {strides = array<i32>} : memref<16x32xf32, #tpu.memory_space<vmem>>, vector<8x16xf32>,
    %c0_43 = arith.constant 0 : index
    %c0_44 = arith.constant 0 : index
    %114 = vector.load %arg21[%c0_43, %c0_44] : memref<16x32xf32, #tpu.memory_space<vmem>>, vector<16x32xf32>
    %c0_45 = arith.constant 0 : index
    %c0_46 = arith.constant 0 : index
    %c0_47 = arith.constant 0 : index
    %115 = vector.load %arg6[%c0_45, %c0_46, %c0_47] : memref<2x32x32xf32, #tpu.memory_space<vmem>>, vector<1x32x32xf32>
    %116 = vector.shape_cast %115 : vector<1x32x32xf32> to vector<32x32xf32>
    %cst_48 = arith.constant dense<0.000000e+00> : vector<16x32xf32>
    %117 = tpu.matmul %114, %116, %cst_48 {dimension_numbers = #tpu.dot_dimension_numbers<[1], [0], [0], [1], [0, 0, 1, 1], [], []>} : vector<16x32xf32>, vector<32x32xf32>, vector<16x32xf32> -> vector<16x32xf32>
    %c0_49 = arith.constant 0 : index
    %c0_50 = arith.constant 0 : index
    %c0_51 = arith.constant 0 : index
    %118 = vector.load %arg7[%c0_49, %c0_50, %c0_51] : memref<2x1x32xf32, #tpu.memory_space<vmem>>, vector<1x1x32xf32>
    %119 = vector.shape_cast %118 : vector<1x1x32xf32> to vector<1x32xf32>
    %120 = vector.broadcast %119 : vector<1x32xf32> to vector<16x32xf32>
    %121 = arith.addf %117, %120 : vector<16x32xf32>
    %122 = arith.addf %121, %22 : vector<16x32xf32>
    %c0_52 = arith.constant 0 : index
    %c0_53 = arith.constant 0 : index
    %c0_54 = arith.constant 0 : index
    %123 = vector.load %arg8[%c0_52, %c0_53, %c0_54] : memref<2x1x32xf32, #tpu.memory_space<vmem>>, vector<1x1x32xf32>
    %124 = vector.shape_cast %123 : vector<1x1x32xf32> to vector<1x32xf32>
    %c0_55 = arith.constant 0 : index
    %c0_56 = arith.constant 0 : index
    %c0_57 = arith.constant 0 : index
    %125 = vector.load %arg9[%c0_55, %c0_56, %c0_57] : memref<2x1x32xf32, #tpu.memory_space<vmem>>, vector<1x1x32xf32>
    %126 = vector.shape_cast %125 : vector<1x1x32xf32> to vector<1x32xf32>
    %cst_58 = arith.constant dense<0.000000e+00> : vector<16xf32>
    %127 = vector.multi_reduction <add>, %122, %cst_58 [1] : vector<16x32xf32> to vector<16xf32>
    %128 = vector.shape_cast %127 : vector<16xf32> to vector<16x1xf32>
    %cst_59 = arith.constant 3.200000e+01 : f32
    %129 = vector.broadcast %cst_59 : f32 to vector<16x1xf32>
    %130 = arith.divf %128, %129 : vector<16x1xf32>
    %131 = vector.broadcast %130 : vector<16x1xf32> to vector<16x32xf32>
    %132 = arith.subf %122, %131 : vector<16x32xf32>
    %133 = arith.mulf %132, %132 : vector<16x32xf32>
    %cst_60 = arith.constant dense<0.000000e+00> : vector<16xf32>
    %134 = vector.multi_reduction <add>, %133, %cst_60 [1] : vector<16x32xf32> to vector<16xf32>
    %135 = vector.shape_cast %134 : vector<16xf32> to vector<16x1xf32>
    %cst_61 = arith.constant 3.200000e+01 : f32
    %136 = vector.broadcast %cst_61 : f32 to vector<16x1xf32>
    %137 = arith.divf %135, %136 : vector<16x1xf32>
    %cst_62 = arith.constant 9.99999996E-13 : f32
    %138 = vector.broadcast %cst_62 : f32 to vector<16x1xf32>
    %139 = arith.addf %137, %138 : vector<16x1xf32>
    %140 = math.rsqrt %139 : vector<16x1xf32>
    %141 = vector.broadcast %140 : vector<16x1xf32> to vector<16x32xf32>
    %142 = arith.mulf %132, %141 : vector<16x32xf32>
    %143 = vector.broadcast %124 : vector<1x32xf32> to vector<16x32xf32>
    %144 = arith.mulf %142, %143 : vector<16x32xf32>
    %145 = vector.broadcast %126 : vector<1x32xf32> to vector<16x32xf32>
    %146 = arith.addf %144, %145 : vector<16x32xf32>
    %c0_63 = arith.constant 0 : index
    %c0_64 = arith.constant 0 : index
    %c0_65 = arith.constant 0 : index
    %147 = vector.load %arg10[%c0_63, %c0_64, %c0_65] : memref<2x32x64xf32, #tpu.memory_space<vmem>>, vector<1x32x64xf32>
    %148 = vector.shape_cast %147 : vector<1x32x64xf32> to vector<32x64xf32>
    %cst_66 = arith.constant dense<0.000000e+00> : vector<16x64xf32>
    %149 = tpu.matmul %146, %148, %cst_66 {dimension_numbers = #tpu.dot_dimension_numbers<[1], [0], [0], [1], [0, 0, 1, 1], [], []>} : vector<16x32xf32>, vector<32x64xf32>, vector<16x64xf32> -> vector<16x64xf32>
    %c0_67 = arith.constant 0 : index
    %c0_68 = arith.constant 0 : index
    %c0_69 = arith.constant 0 : index
    %150 = vector.load %arg11[%c0_67, %c0_68, %c0_69] : memref<2x1x64xf32, #tpu.memory_space<vmem>>, vector<1x1x64xf32>
    %151 = vector.shape_cast %150 : vector<1x1x64xf32> to vector<1x64xf32>
    %152 = vector.broadcast %151 : vector<1x64xf32> to vector<16x64xf32>
    %153 = arith.addf %149, %152 : vector<16x64xf32>
    %154 = arith.mulf %153, %153 : vector<16x64xf32>
    %155 = arith.mulf %153, %154 : vector<16x64xf32>
    %cst_70 = arith.constant 4.471500e-02 : f32
    %156 = vector.broadcast %cst_70 : f32 to vector<16x64xf32>
    %157 = arith.mulf %156, %155 : vector<16x64xf32>
    %158 = arith.addf %153, %157 : vector<16x64xf32>
    %cst_71 = arith.constant 0.797884583 : f32
    %159 = vector.broadcast %cst_71 : f32 to vector<16x64xf32>
    %160 = arith.mulf %159, %158 : vector<16x64xf32>
    %161 = math.tanh %160 : vector<16x64xf32>
    %cst_72 = arith.constant 1.000000e+00 : f32
    %162 = vector.broadcast %cst_72 : f32 to vector<16x64xf32>
    %163 = arith.addf %162, %161 : vector<16x64xf32>
    %cst_73 = arith.constant 5.000000e-01 : f32
    %164 = vector.broadcast %cst_73 : f32 to vector<16x64xf32>
    %165 = arith.mulf %164, %163 : vector<16x64xf32>
    %166 = arith.mulf %153, %165 : vector<16x64xf32>
    %c0_74 = arith.constant 0 : index
    %c0_75 = arith.constant 0 : index
    %c0_76 = arith.constant 0 : index
    %167 = vector.load %arg12[%c0_74, %c0_75, %c0_76] : memref<2x64x32xf32, #tpu.memory_space<vmem>>, vector<1x64x32xf32>
    %168 = vector.shape_cast %167 : vector<1x64x32xf32> to vector<64x32xf32>
    %cst_77 = arith.constant dense<0.000000e+00> : vector<16x32xf32>
    %169 = tpu.matmul %166, %168, %cst_77 {dimension_numbers = #tpu.dot_dimension_numbers<[1], [0], [0], [1], [0, 0, 1, 1], [], []>} : vector<16x64xf32>, vector<64x32xf32>, vector<16x32xf32> -> vector<16x32xf32>
    %c0_78 = arith.constant 0 : index
    %c0_79 = arith.constant 0 : index
    %c0_80 = arith.constant 0 : index
    %170 = vector.load %arg13[%c0_78, %c0_79, %c0_80] : memref<2x1x32xf32, #tpu.memory_space<vmem>>, vector<1x1x32xf32>
    %171 = vector.shape_cast %170 : vector<1x1x32xf32> to vector<1x32xf32>
    %172 = vector.broadcast %171 : vector<1x32xf32> to vector<16x32xf32>
    %173 = arith.addf %169, %172 : vector<16x32xf32>
    %174 = arith.addf %173, %146 : vector<16x32xf32>
    %c0_81 = arith.constant 0 : index
    %c0_82 = arith.constant 0 : index
    %c0_83 = arith.constant 0 : index
    %175 = vector.load %arg14[%c0_81, %c0_82, %c0_83] : memref<2x1x32xf32, #tpu.memory_space<vmem>>, vector<1x1x32xf32>
    %176 = vector.shape_cast %175 : vector<1x1x32xf32> to vector<1x32xf32>
    %c0_84 = arith.constant 0 : index
    %c0_85 = arith.constant 0 : index
    %c0_86 = arith.constant 0 : index
    %177 = vector.load %arg15[%c0_84, %c0_85, %c0_86] : memref<2x1x32xf32, #tpu.memory_space<vmem>>, vector<1x1x32xf32>
    %178 = vector.shape_cast %177 : vector<1x1x32xf32> to vector<1x32xf32>
    %cst_87 = arith.constant dense<0.000000e+00> : vector<16xf32>
    %179 = vector.multi_reduction <add>, %174, %cst_87 [1] : vector<16x32xf32> to vector<16xf32>
    %180 = vector.shape_cast %179 : vector<16xf32> to vector<16x1xf32>
    %cst_88 = arith.constant 3.200000e+01 : f32
    %181 = vector.broadcast %cst_88 : f32 to vector<16x1xf32>
    %182 = arith.divf %180, %181 : vector<16x1xf32>
    %183 = vector.broadcast %182 : vector<16x1xf32> to vector<16x32xf32>
    %184 = arith.subf %174, %183 : vector<16x32xf32>
    %185 = arith.mulf %184, %184 : vector<16x32xf32>
    %cst_89 = arith.constant dense<0.000000e+00> : vector<16xf32>
    %186 = vector.multi_reduction <add>, %185, %cst_89 [1] : vector<16x32xf32> to vector<16xf32>
    %187 = vector.shape_cast %186 : vector<16xf32> to vector<16x1xf32>
    %cst_90 = arith.constant 3.200000e+01 : f32
    %188 = vector.broadcast %cst_90 : f32 to vector<16x1xf32>
    %189 = arith.divf %187, %188 : vector<16x1xf32>
    %cst_91 = arith.constant 9.99999996E-13 : f32
    %190 = vector.broadcast %cst_91 : f32 to vector<16x1xf32>
    %191 = arith.addf %189, %190 : vector<16x1xf32>
    %192 = math.rsqrt %191 : vector<16x1xf32>
    %193 = vector.broadcast %192 : vector<16x1xf32> to vector<16x32xf32>
    %194 = arith.mulf %184, %193 : vector<16x32xf32>
    %195 = vector.broadcast %176 : vector<1x32xf32> to vector<16x32xf32>
    %196 = arith.mulf %194, %195 : vector<16x32xf32>
    %197 = vector.broadcast %178 : vector<1x32xf32> to vector<16x32xf32>
    %198 = arith.addf %196, %197 : vector<16x32xf32>
    %c1 = arith.constant 1 : index
    %c0_92 = arith.constant 0 : index
    %c0_93 = arith.constant 0 : index
    %199 = vector.load %arg4[%c1, %c0_92, %c0_93] : memref<2x32x96xf32, #tpu.memory_space<vmem>>, vector<1x32x96xf32>
    %200 = vector.shape_cast %199 : vector<1x32x96xf32> to vector<32x96xf32>
    %cst_94 = arith.constant dense<0.000000e+00> : vector<16x96xf32>
    %201 = tpu.matmul %198, %200, %cst_94 {dimension_numbers = #tpu.dot_dimension_numbers<[1], [0], [0], [1], [0, 0, 1, 1], [], []>} : vector<16x32xf32>, vector<32x96xf32>, vector<16x96xf32> -> vector<16x96xf32>
    %c1_95 = arith.constant 1 : index
    %c0_96 = arith.constant 0 : index
    %c0_97 = arith.constant 0 : index
    %202 = vector.load %arg5[%c1_95, %c0_96, %c0_97] : memref<2x1x96xf32, #tpu.memory_space<vmem>>, vector<1x1x96xf32>
    %203 = vector.shape_cast %202 : vector<1x1x96xf32> to vector<1x96xf32>
    %204 = vector.broadcast %203 : vector<1x96xf32> to vector<16x96xf32>
    %205 = arith.addf %201, %204 : vector<16x96xf32>
    %206 = vector.extract_strided_slice %205 {offsets = [0, 0], sizes = [16, 32], strides = [1, 1]} : vector<16x96xf32> to vector<16x32xf32>
    %cst_98 = arith.constant 2.500000e-01 : f32
    %207 = vector.broadcast %cst_98 : f32 to vector<16x32xf32>
    %208 = arith.mulf %206, %207 : vector<16x32xf32>
    %209 = vector.extract_strided_slice %205 {offsets = [0, 32], sizes = [16, 32], strides = [1, 1]} : vector<16x96xf32> to vector<16x32xf32>
    %210 = vector.extract_strided_slice %205 {offsets = [0, 64], sizes = [16, 32], strides = [1, 1]} : vector<16x96xf32> to vector<16x32xf32>
    %211 = vector.extract_strided_slice %27 {offsets = [0, 0], sizes = [1, 8], strides = [1, 1]} : vector<2x8xf32> to vector<1x8xf32>
    %212 = vector.extract_strided_slice %208 {offsets = [0, 0], sizes = [8, 16], strides = [1, 1]} : vector<16x32xf32> to vector<8x16xf32>
    %213 = vector.extract_strided_slice %209 {offsets = [0, 0], sizes = [8, 16], strides = [1, 1]} : vector<16x32xf32> to vector<8x16xf32>
    %214 = vector.extract_strided_slice %210 {offsets = [0, 0], sizes = [8, 16], strides = [1, 1]} : vector<16x32xf32> to vector<8x16xf32>
    %cst_99 = arith.constant dense<0.000000e+00> : vector<8x8xf32>
    %215 = tpu.matmul %212, %213, %cst_99 {dimension_numbers = #tpu.dot_dimension_numbers<[1], [1], [0], [0], [0, 0, 1, 0], [], []>} : vector<8x16xf32>, vector<8x16xf32>, vector<8x8xf32> -> vector<8x8xf32>
    %216 = vector.broadcast %211 : vector<1x8xf32> to vector<8x8xf32>
    %217 = arith.addf %215, %216 : vector<8x8xf32>
    %cst_100 = arith.constant dense<0xFF800000> : vector<8xf32>
    %218 = vector.multi_reduction <maximumf>, %217, %cst_100 [1] : vector<8x8xf32> to vector<8xf32>
    %219 = vector.shape_cast %218 : vector<8xf32> to vector<8x1xf32>
    %220 = vector.broadcast %219 : vector<8x1xf32> to vector<8x8xf32>
    %221 = arith.subf %217, %220 : vector<8x8xf32>
    %222 = math.exp %221 : vector<8x8xf32>
    %cst_101 = arith.constant dense<0.000000e+00> : vector<8xf32>
    %223 = vector.multi_reduction <add>, %222, %cst_101 [1] : vector<8x8xf32> to vector<8xf32>
    %224 = vector.shape_cast %223 : vector<8xf32> to vector<8x1xf32>
    %225 = tpu.reciprocal %224 {approx = true} : vector<8x1xf32> -> vector<8x1xf32>
    %226 = vector.broadcast %225 : vector<8x1xf32> to vector<8x8xf32>
    %227 = arith.mulf %222, %226 : vector<8x8xf32>
    %cst_102 = arith.constant dense<0.000000e+00> : vector<8x16xf32>
    %228 = tpu.matmul %227, %214, %cst_102 {dimension_numbers = #tpu.dot_dimension_numbers<[1], [0], [0], [1], [0, 0, 1, 1], [], []>} : vector<8x8xf32>, vector<8x16xf32>, vector<8x16xf32> -> vector<8x16xf32>
    %c0_103 = arith.constant 0 : index
    %c0_104 = arith.constant 0 : index
    %229 = vector.load %arg21[%c0_103, %c0_104] : memref<16x32xf32, #tpu.memory_space<vmem>>, vector<8x16xf32>
    tpu.vector_store %arg21[%c0_103, %c0_104], %228 {strides = array<i32>} : memref<16x32xf32, #tpu.memory_space<vmem>>, vector<8x16xf32>,
    %230 = vector.extract_strided_slice %208 {offsets = [0, 16], sizes = [8, 16], strides = [1, 1]} : vector<16x32xf32> to vector<8x16xf32>
    %231 = vector.extract_strided_slice %209 {offsets = [0, 16], sizes = [8, 16], strides = [1, 1]} : vector<16x32xf32> to vector<8x16xf32>
    %232 = vector.extract_strided_slice %210 {offsets = [0, 16], sizes = [8, 16], strides = [1, 1]} : vector<16x32xf32> to vector<8x16xf32>
    %cst_105 = arith.constant dense<0.000000e+00> : vector<8x8xf32>
    %233 = tpu.matmul %230, %231, %cst_105 {dimension_numbers = #tpu.dot_dimension_numbers<[1], [1], [0], [0], [0, 0, 1, 0], [], []>} : vector<8x16xf32>, vector<8x16xf32>, vector<8x8xf32> -> vector<8x8xf32>
    %234 = vector.broadcast %211 : vector<1x8xf32> to vector<8x8xf32>
    %235 = arith.addf %233, %234 : vector<8x8xf32>
    %cst_106 = arith.constant dense<0xFF800000> : vector<8xf32>
    %236 = vector.multi_reduction <maximumf>, %235, %cst_106 [1] : vector<8x8xf32> to vector<8xf32>
    %237 = vector.shape_cast %236 : vector<8xf32> to vector<8x1xf32>
    %238 = vector.broadcast %237 : vector<8x1xf32> to vector<8x8xf32>
    %239 = arith.subf %235, %238 : vector<8x8xf32>
    %240 = math.exp %239 : vector<8x8xf32>
    %cst_107 = arith.constant dense<0.000000e+00> : vector<8xf32>
    %241 = vector.multi_reduction <add>, %240, %cst_107 [1] : vector<8x8xf32> to vector<8xf32>
    %242 = vector.shape_cast %241 : vector<8xf32> to vector<8x1xf32>
    %243 = tpu.reciprocal %242 {approx = true} : vector<8x1xf32> -> vector<8x1xf32>
    %244 = vector.broadcast %243 : vector<8x1xf32> to vector<8x8xf32>
    %245 = arith.mulf %240, %244 : vector<8x8xf32>
    %cst_108 = arith.constant dense<0.000000e+00> : vector<8x16xf32>
    %246 = tpu.matmul %245, %232, %cst_108 {dimension_numbers = #tpu.dot_dimension_numbers<[1], [0], [0], [1], [0, 0, 1, 1], [], []>} : vector<8x8xf32>, vector<8x16xf32>, vector<8x16xf32> -> vector<8x16xf32>
    %c0_109 = arith.constant 0 : index
    %c16_110 = arith.constant 16 : index
    %247 = vector.load %arg21[%c0_109, %c16_110] : memref<16x32xf32, #tpu.memory_space<vmem>>, vector<8x16xf32>
    tpu.vector_store %arg21[%c0_109, %c16_110], %246 {strides = array<i32>} : memref<16x32xf32, #tpu.memory_space<vmem>>, vector<8x16xf32>,
    %248 = vector.extract_strided_slice %27 {offsets = [1, 0], sizes = [1, 8], strides = [1, 1]} : vector<2x8xf32> to vector<1x8xf32>
    %249 = vector.extract_strided_slice %208 {offsets = [8, 0], sizes = [8, 16], strides = [1, 1]} : vector<16x32xf32> to vector<8x16xf32>
    %250 = vector.extract_strided_slice %209 {offsets = [8, 0], sizes = [8, 16], strides = [1, 1]} : vector<16x32xf32> to vector<8x16xf32>
    %251 = vector.extract_strided_slice %210 {offsets = [8, 0], sizes = [8, 16], strides = [1, 1]} : vector<16x32xf32> to vector<8x16xf32>
    %cst_111 = arith.constant dense<0.000000e+00> : vector<8x8xf32>
    %252 = tpu.matmul %249, %250, %cst_111 {dimension_numbers = #tpu.dot_dimension_numbers<[1], [1], [0], [0], [0, 0, 1, 0], [], []>} : vector<8x16xf32>, vector<8x16xf32>, vector<8x8xf32> -> vector<8x8xf32>
    %253 = vector.broadcast %248 : vector<1x8xf32> to vector<8x8xf32>
    %254 = arith.addf %252, %253 : vector<8x8xf32>
    %cst_112 = arith.constant dense<0xFF800000> : vector<8xf32>
    %255 = vector.multi_reduction <maximumf>, %254, %cst_112 [1] : vector<8x8xf32> to vector<8xf32>
    %256 = vector.shape_cast %255 : vector<8xf32> to vector<8x1xf32>
    %257 = vector.broadcast %256 : vector<8x1xf32> to vector<8x8xf32>
    %258 = arith.subf %254, %257 : vector<8x8xf32>
    %259 = math.exp %258 : vector<8x8xf32>
    %cst_113 = arith.constant dense<0.000000e+00> : vector<8xf32>
    %260 = vector.multi_reduction <add>, %259, %cst_113 [1] : vector<8x8xf32> to vector<8xf32>
    %261 = vector.shape_cast %260 : vector<8xf32> to vector<8x1xf32>
    %262 = tpu.reciprocal %261 {approx = true} : vector<8x1xf32> -> vector<8x1xf32>
    %263 = vector.broadcast %262 : vector<8x1xf32> to vector<8x8xf32>
    %264 = arith.mulf %259, %263 : vector<8x8xf32>
    %cst_114 = arith.constant dense<0.000000e+00> : vector<8x16xf32>
    %265 = tpu.matmul %264, %251, %cst_114 {dimension_numbers = #tpu.dot_dimension_numbers<[1], [0], [0], [1], [0, 0, 1, 1], [], []>} : vector<8x8xf32>, vector<8x16xf32>, vector<8x16xf32> -> vector<8x16xf32>
    %c8_115 = arith.constant 8 : index
    %c0_116 = arith.constant 0 : index
    %266 = vector.load %arg21[%c8_115, %c0_116] : memref<16x32xf32, #tpu.memory_space<vmem>>, vector<8x16xf32>
    tpu.vector_store %arg21[%c8_115, %c0_116], %265 {strides = array<i32>} : memref<16x32xf32, #tpu.memory_space<vmem>>, vector<8x16xf32>,
    %267 = vector.extract_strided_slice %208 {offsets = [8, 16], sizes = [8, 16], strides = [1, 1]} : vector<16x32xf32> to vector<8x16xf32>
    %268 = vector.extract_strided_slice %209 {offsets = [8, 16], sizes = [8, 16], strides = [1, 1]} : vector<16x32xf32> to vector<8x16xf32>
    %269 = vector.extract_strided_slice %210 {offsets = [8, 16], sizes = [8, 16], strides = [1, 1]} : vector<16x32xf32> to vector<8x16xf32>
    %cst_117 = arith.constant dense<0.000000e+00> : vector<8x8xf32>
    %270 = tpu.matmul %267, %268, %cst_117 {dimension_numbers = #tpu.dot_dimension_numbers<[1], [1], [0], [0], [0, 0, 1, 0], [], []>} : vector<8x16xf32>, vector<8x16xf32>, vector<8x8xf32> -> vector<8x8xf32>
    %271 = vector.broadcast %248 : vector<1x8xf32> to vector<8x8xf32>
    %272 = arith.addf %270, %271 : vector<8x8xf32>
    %cst_118 = arith.constant dense<0xFF800000> : vector<8xf32>
    %273 = vector.multi_reduction <maximumf>, %272, %cst_118 [1] : vector<8x8xf32> to vector<8xf32>
    %274 = vector.shape_cast %273 : vector<8xf32> to vector<8x1xf32>
    %275 = vector.broadcast %274 : vector<8x1xf32> to vector<8x8xf32>
    %276 = arith.subf %272, %275 : vector<8x8xf32>
    %277 = math.exp %276 : vector<8x8xf32>
    %cst_119 = arith.constant dense<0.000000e+00> : vector<8xf32>
    %278 = vector.multi_reduction <add>, %277, %cst_119 [1] : vector<8x8xf32> to vector<8xf32>
    %279 = vector.shape_cast %278 : vector<8xf32> to vector<8x1xf32>
    %280 = tpu.reciprocal %279 {approx = true} : vector<8x1xf32> -> vector<8x1xf32>
    %281 = vector.broadcast %280 : vector<8x1xf32> to vector<8x8xf32>
    %282 = arith.mulf %277, %281 : vector<8x8xf32>
    %cst_120 = arith.constant dense<0.000000e+00> : vector<8x16xf32>
    %283 = tpu.matmul %282, %269, %cst_120 {dimension_numbers = #tpu.dot_dimension_numbers<[1], [0], [0], [1], [0, 0, 1, 1], [], []>} : vector<8x8xf32>, vector<8x16xf32>, vector<8x16xf32> -> vector<8x16xf32>
    %c8_121 = arith.constant 8 : index
    %c16_122 = arith.constant 16 : index
    %284 = vector.load %arg21[%c8_121, %c16_122] : memref<16x32xf32, #tpu.memory_space<vmem>>, vector<8x16xf32>
    tpu.vector_store %arg21[%c8_121, %c16_122], %283 {strides = array<i32>} : memref<16x32xf32, #tpu.memory_space<vmem>>, vector<8x16xf32>,
    %c0_123 = arith.constant 0 : index
    %c0_124 = arith.constant 0 : index
    %285 = vector.load %arg21[%c0_123, %c0_124] : memref<16x32xf32, #tpu.memory_space<vmem>>, vector<16x32xf32>
    %c1_125 = arith.constant 1 : index
    %c0_126 = arith.constant 0 : index
    %c0_127 = arith.constant 0 : index
    %286 = vector.load %arg6[%c1_125, %c0_126, %c0_127] : memref<2x32x32xf32, #tpu.memory_space<vmem>>, vector<1x32x32xf32>
    %287 = vector.shape_cast %286 : vector<1x32x32xf32> to vector<32x32xf32>
    %cst_128 = arith.constant dense<0.000000e+00> : vector<16x32xf32>
    %288 = tpu.matmul %285, %287, %cst_128 {dimension_numbers = #tpu.dot_dimension_numbers<[1], [0], [0], [1], [0, 0, 1, 1], [], []>} : vector<16x32xf32>, vector<32x32xf32>, vector<16x32xf32> -> vector<16x32xf32>
    %c1_129 = arith.constant 1 : index
    %c0_130 = arith.constant 0 : index
    %c0_131 = arith.constant 0 : index
    %289 = vector.load %arg7[%c1_129, %c0_130, %c0_131] : memref<2x1x32xf32, #tpu.memory_space<vmem>>, vector<1x1x32xf32>
    %290 = vector.shape_cast %289 : vector<1x1x32xf32> to vector<1x32xf32>
    %291 = vector.broadcast %290 : vector<1x32xf32> to vector<16x32xf32>
    %292 = arith.addf %288, %291 : vector<16x32xf32>
    %293 = arith.addf %292, %198 : vector<16x32xf32>
    %c1_132 = arith.constant 1 : index
    %c0_133 = arith.constant 0 : index
    %c0_134 = arith.constant 0 : index
    %294 = vector.load %arg8[%c1_132, %c0_133, %c0_134] : memref<2x1x32xf32, #tpu.memory_space<vmem>>, vector<1x1x32xf32>
    %295 = vector.shape_cast %294 : vector<1x1x32xf32> to vector<1x32xf32>
    %c1_135 = arith.constant 1 : index
    %c0_136 = arith.constant 0 : index
    %c0_137 = arith.constant 0 : index
    %296 = vector.load %arg9[%c1_135, %c0_136, %c0_137] : memref<2x1x32xf32, #tpu.memory_space<vmem>>, vector<1x1x32xf32>
    %297 = vector.shape_cast %296 : vector<1x1x32xf32> to vector<1x32xf32>
    %cst_138 = arith.constant dense<0.000000e+00> : vector<16xf32>
    %298 = vector.multi_reduction <add>, %293, %cst_138 [1] : vector<16x32xf32> to vector<16xf32>
    %299 = vector.shape_cast %298 : vector<16xf32> to vector<16x1xf32>
    %cst_139 = arith.constant 3.200000e+01 : f32
    %300 = vector.broadcast %cst_139 : f32 to vector<16x1xf32>
    %301 = arith.divf %299, %300 : vector<16x1xf32>
    %302 = vector.broadcast %301 : vector<16x1xf32> to vector<16x32xf32>
    %303 = arith.subf %293, %302 : vector<16x32xf32>
    %304 = arith.mulf %303, %303 : vector<16x32xf32>
    %cst_140 = arith.constant dense<0.000000e+00> : vector<16xf32>
    %305 = vector.multi_reduction <add>, %304, %cst_140 [1] : vector<16x32xf32> to vector<16xf32>
    %306 = vector.shape_cast %305 : vector<16xf32> to vector<16x1xf32>
    %cst_141 = arith.constant 3.200000e+01 : f32
    %307 = vector.broadcast %cst_141 : f32 to vector<16x1xf32>
    %308 = arith.divf %306, %307 : vector<16x1xf32>
    %cst_142 = arith.constant 9.99999996E-13 : f32
    %309 = vector.broadcast %cst_142 : f32 to vector<16x1xf32>
    %310 = arith.addf %308, %309 : vector<16x1xf32>
    %311 = math.rsqrt %310 : vector<16x1xf32>
    %312 = vector.broadcast %311 : vector<16x1xf32> to vector<16x32xf32>
    %313 = arith.mulf %303, %312 : vector<16x32xf32>
    %314 = vector.broadcast %295 : vector<1x32xf32> to vector<16x32xf32>
    %315 = arith.mulf %313, %314 : vector<16x32xf32>
    %316 = vector.broadcast %297 : vector<1x32xf32> to vector<16x32xf32>
    %317 = arith.addf %315, %316 : vector<16x32xf32>
    %c1_143 = arith.constant 1 : index
    %c0_144 = arith.constant 0 : index
    %c0_145 = arith.constant 0 : index
    %318 = vector.load %arg10[%c1_143, %c0_144, %c0_145] : memref<2x32x64xf32, #tpu.memory_space<vmem>>, vector<1x32x64xf32>
    %319 = vector.shape_cast %318 : vector<1x32x64xf32> to vector<32x64xf32>
    %cst_146 = arith.constant dense<0.000000e+00> : vector<16x64xf32>
    %320 = tpu.matmul %317, %319, %cst_146 {dimension_numbers = #tpu.dot_dimension_numbers<[1], [0], [0], [1], [0, 0, 1, 1], [], []>} : vector<16x32xf32>, vector<32x64xf32>, vector<16x64xf32> -> vector<16x64xf32>
    %c1_147 = arith.constant 1 : index
    %c0_148 = arith.constant 0 : index
    %c0_149 = arith.constant 0 : index
    %321 = vector.load %arg11[%c1_147, %c0_148, %c0_149] : memref<2x1x64xf32, #tpu.memory_space<vmem>>, vector<1x1x64xf32>
    %322 = vector.shape_cast %321 : vector<1x1x64xf32> to vector<1x64xf32>
    %323 = vector.broadcast %322 : vector<1x64xf32> to vector<16x64xf32>
    %324 = arith.addf %320, %323 : vector<16x64xf32>
    %325 = arith.mulf %324, %324 : vector<16x64xf32>
    %326 = arith.mulf %324, %325 : vector<16x64xf32>
    %cst_150 = arith.constant 4.471500e-02 : f32
    %327 = vector.broadcast %cst_150 : f32 to vector<16x64xf32>
    %328 = arith.mulf %327, %326 : vector<16x64xf32>
    %329 = arith.addf %324, %328 : vector<16x64xf32>
    %cst_151 = arith.constant 0.797884583 : f32
    %330 = vector.broadcast %cst_151 : f32 to vector<16x64xf32>
    %331 = arith.mulf %330, %329 : vector<16x64xf32>
    %332 = math.tanh %331 : vector<16x64xf32>
    %cst_152 = arith.constant 1.000000e+00 : f32
    %333 = vector.broadcast %cst_152 : f32 to vector<16x64xf32>
    %334 = arith.addf %333, %332 : vector<16x64xf32>
    %cst_153 = arith.constant 5.000000e-01 : f32
    %335 = vector.broadcast %cst_153 : f32 to vector<16x64xf32>
    %336 = arith.mulf %335, %334 : vector<16x64xf32>
    %337 = arith.mulf %324, %336 : vector<16x64xf32>
    %c1_154 = arith.constant 1 : index
    %c0_155 = arith.constant 0 : index
    %c0_156 = arith.constant 0 : index
    %338 = vector.load %arg12[%c1_154, %c0_155, %c0_156] : memref<2x64x32xf32, #tpu.memory_space<vmem>>, vector<1x64x32xf32>
    %339 = vector.shape_cast %338 : vector<1x64x32xf32> to vector<64x32xf32>
    %cst_157 = arith.constant dense<0.000000e+00> : vector<16x32xf32>
    %340 = tpu.matmul %337, %339, %cst_157 {dimension_numbers = #tpu.dot_dimension_numbers<[1], [0], [0], [1], [0, 0, 1, 1], [], []>} : vector<16x64xf32>, vector<64x32xf32>, vector<16x32xf32> -> vector<16x32xf32>
    %c1_158 = arith.constant 1 : index
    %c0_159 = arith.constant 0 : index
    %c0_160 = arith.constant 0 : index
    %341 = vector.load %arg13[%c1_158, %c0_159, %c0_160] : memref<2x1x32xf32, #tpu.memory_space<vmem>>, vector<1x1x32xf32>
    %342 = vector.shape_cast %341 : vector<1x1x32xf32> to vector<1x32xf32>
    %343 = vector.broadcast %342 : vector<1x32xf32> to vector<16x32xf32>
    %344 = arith.addf %340, %343 : vector<16x32xf32>
    %345 = arith.addf %344, %317 : vector<16x32xf32>
    %c1_161 = arith.constant 1 : index
    %c0_162 = arith.constant 0 : index
    %c0_163 = arith.constant 0 : index
    %346 = vector.load %arg14[%c1_161, %c0_162, %c0_163] : memref<2x1x32xf32, #tpu.memory_space<vmem>>, vector<1x1x32xf32>
    %347 = vector.shape_cast %346 : vector<1x1x32xf32> to vector<1x32xf32>
    %c1_164 = arith.constant 1 : index
    %c0_165 = arith.constant 0 : index
    %c0_166 = arith.constant 0 : index
    %348 = vector.load %arg15[%c1_164, %c0_165, %c0_166] : memref<2x1x32xf32, #tpu.memory_space<vmem>>, vector<1x1x32xf32>
    %349 = vector.shape_cast %348 : vector<1x1x32xf32> to vector<1x32xf32>
    %cst_167 = arith.constant dense<0.000000e+00> : vector<16xf32>
    %350 = vector.multi_reduction <add>, %345, %cst_167 [1] : vector<16x32xf32> to vector<16xf32>
    %351 = vector.shape_cast %350 : vector<16xf32> to vector<16x1xf32>
    %cst_168 = arith.constant 3.200000e+01 : f32
    %352 = vector.broadcast %cst_168 : f32 to vector<16x1xf32>
    %353 = arith.divf %351, %352 : vector<16x1xf32>
    %354 = vector.broadcast %353 : vector<16x1xf32> to vector<16x32xf32>
    %355 = arith.subf %345, %354 : vector<16x32xf32>
    %356 = arith.mulf %355, %355 : vector<16x32xf32>
    %cst_169 = arith.constant dense<0.000000e+00> : vector<16xf32>
    %357 = vector.multi_reduction <add>, %356, %cst_169 [1] : vector<16x32xf32> to vector<16xf32>
    %358 = vector.shape_cast %357 : vector<16xf32> to vector<16x1xf32>
    %cst_170 = arith.constant 3.200000e+01 : f32
    %359 = vector.broadcast %cst_170 : f32 to vector<16x1xf32>
    %360 = arith.divf %358, %359 : vector<16x1xf32>
    %cst_171 = arith.constant 9.99999996E-13 : f32
    %361 = vector.broadcast %cst_171 : f32 to vector<16x1xf32>
    %362 = arith.addf %360, %361 : vector<16x1xf32>
    %363 = math.rsqrt %362 : vector<16x1xf32>
    %364 = vector.broadcast %363 : vector<16x1xf32> to vector<16x32xf32>
    %365 = arith.mulf %355, %364 : vector<16x32xf32>
    %366 = vector.broadcast %347 : vector<1x32xf32> to vector<16x32xf32>
    %367 = arith.mulf %365, %366 : vector<16x32xf32>
    %368 = vector.broadcast %349 : vector<1x32xf32> to vector<16x32xf32>
    %369 = arith.addf %367, %368 : vector<16x32xf32>
    %c0_172 = arith.constant 0 : index
    %c0_173 = arith.constant 0 : index
    %370 = vector.load %arg16[%c0_172, %c0_173] : memref<32x32xf32, #tpu.memory_space<vmem>>, vector<32x32xf32>
    %cst_174 = arith.constant dense<0.000000e+00> : vector<16x32xf32>
    %371 = tpu.matmul %369, %370, %cst_174 {dimension_numbers = #tpu.dot_dimension_numbers<[1], [0], [0], [1], [0, 0, 1, 1], [], []>} : vector<16x32xf32>, vector<32x32xf32>, vector<16x32xf32> -> vector<16x32xf32>
    %c0_175 = arith.constant 0 : index
    %c0_176 = arith.constant 0 : index
    %372 = vector.load %arg17[%c0_175, %c0_176] : memref<1x32xf32, #tpu.memory_space<vmem>>, vector<1x32xf32>
    %373 = vector.broadcast %372 : vector<1x32xf32> to vector<16x32xf32>
    %374 = arith.addf %371, %373 : vector<16x32xf32>
    %375 = math.tanh %374 : vector<16x32xf32>
    %c0_177 = arith.constant 0 : index
    %c0_178 = arith.constant 0 : index
    %376 = vector.load %arg18[%c0_177, %c0_178] : memref<32x3xf32, #tpu.memory_space<vmem>>, vector<32x3xf32>
    %cst_179 = arith.constant dense<0.000000e+00> : vector<16x3xf32>
    %377 = tpu.matmul %375, %376, %cst_179 {dimension_numbers = #tpu.dot_dimension_numbers<[1], [0], [0], [1], [0, 0, 1, 1], [], []>} : vector<16x32xf32>, vector<32x3xf32>, vector<16x3xf32> -> vector<16x3xf32>
    %c0_180 = arith.constant 0 : index
    %c0_181 = arith.constant 0 : index
    %378 = vector.load %arg19[%c0_180, %c0_181] : memref<1x3xf32, #tpu.memory_space<vmem>>, vector<1x3xf32>
    %379 = vector.broadcast %378 : vector<1x3xf32> to vector<16x3xf32>
    %380 = arith.addf %377, %379 : vector<16x3xf32>
    %c0_182 = arith.constant 0 : index
    %c0_183 = arith.constant 0 : index
    %381 = vector.load %arg20[%c0_182, %c0_183] : memref<16x3xf32, #tpu.memory_space<vmem>>, vector<16x3xf32>
    tpu.vector_store %arg20[%c0_182, %c0_183], %380 {strides = array<i32>} : memref<16x3xf32, #tpu.memory_space<vmem>>, vector<16x3xf32>,
    return
  }
}

</mosaic_0001>

<bundles_post_ra>
// kernel: bert_for_sequence_classification.1
= control target key start
LH: loop header
LB: loop body
LE: loop exit
PB: predicated region body
PF: predicated region fallthrough
CT: control target
= control target key end

     0   :  { %vm69_vm0 = vcmask 261120   ;;  %v3119_v34 = vmov 0.0   ;;  %vm3120_vm1 = vmmov 0   ;;  %s3121_s28 = smov 80   ;;  %s3123_s29 = smov 112   ;;  %vm217_vm2 = vcmask 130048   ;;  %s3679_s0 = inlined_call_operand.vmem [shape: f32[16,32], index: 0, kind: input, shape index: {}]   ;;  %s3680_s4 = inlined_call_operand.vmem [shape: f32[2,32,96], index: 4, kind: input, shape index: {}]   ;;  %s3681_s2 = inlined_call_operand.vmem [shape: f32[1,32], index: 2, kind: input, shape index: {}]   ;;  %s3682_s3 = inlined_call_operand.vmem [shape: f32[1,32], index: 3, kind: input, shape index: {}]   ;;  %s3683_s5 = inlined_call_operand.vmem [shape: f32[2,1,96], index: 5, kind: input, shape index: {}]   ;;  %s3684_s1 = inlined_call_operand.vmem [shape: f32[2,8], index: 1, kind: input, shape index: {}]   ;;  %s3685_s6 = inlined_call_operand.vmem [shape: f32[2,32,32], index: 6, kind: input, shape index: {}]   ;;  %s3686_s7 = inlined_call_operand.vmem [shape: f32[2,1,32], index: 7, kind: input, shape index: {}]   ;;  %s3687_s10 = inlined_call_operand.vmem [shape: f32[2,32,64], index: 10, kind: input, shape index: {}]   ;;  %s3688_s8 = inlined_call_operand.vmem [shape: f32[2,1,32], index: 8, kind: input, shape index: {}]   ;;  %s3689_s9 = inlined_call_operand.vmem [shape: f32[2,1,32], index: 9, kind: input, shape index: {}]   ;;  %s3690_s12 = inlined_call_operand.vmem [shape: f32[2,64,32], index: 12, kind: input, shape index: {}]   ;;  %s3691_s11 = inlined_call_operand.vmem [shape: f32[2,1,64], index: 11, kind: input, shape index: {}]   ;;  %s3692_s13 = inlined_call_operand.vmem [shape: f32[2,1,32], index: 13, kind: input, shape index: {}]   ;;  %s3693_s14 = inlined_call_operand.vmem [shape: f32[2,1,32], index: 14, kind: input, shape index: {}]   ;;  %s3694_s15 = inlined_call_operand.vmem [shape: f32[2,1,32], index: 15, kind: input, shape index: {}]   ;;  %s3695_s16 = inlined_call_operand.vmem [shape: f32[32,32], index: 16, kind: input, shape index: {}]   ;;  %s3696_s18 = inlined_call_operand.vmem [shape: f32[32,3], index: 18, kind: input, shape index: {}]   ;;  %s3697_s17 = inlined_call_operand.vmem [shape: f32[1,32], index: 17, kind: input, shape index: {}]   ;;  %s3698_s19 = inlined_call_operand.vmem [shape: f32[1,3], index: 19, kind: input, shape index: {}]   ;;  %s3699_s20 = inlined_call_operand.vmem [shape: f32[16,3], index: 20, kind: output, shape index: {}]  }
   0x1   :  { %3703 = sst [smem:[#allocation3_spill]] %s3679_s0  ;;  %2852 = vmatprep.subr.mxu1 %v3119_v34  ;;  %2854 = vmatprep.mubr.msk.f32.mxu1 %vm3120_vm1, %v3119_v34  ;;  %v210_v48 = vlaneseq  ;;  %v113_v49 = vld [vmem:[%s3684_s1] sm:$0x3]  ;;  %vm293_vm3 = vcmask 64512   ;;  %s3124_s1 = smov 48   ;;  %vm551_vm4 = vcmask 261248  }
   0x2   :  { %3704 = sst [smem:[#allocation4_spill]] %s3680_s4  ;;  %v114_v50 = vsub.f32 1.0, %v113_v49  ;;  %s3125_s21 = smov 64   ;;  %vm1158_vm5 = vcmask 523264   ;;  %vm2642_vm6 = vcmask 23552  }
   0x3   :  { %3705 = sst [smem:[#allocation5_spill]] %s3681_s2  ;;  %v211_v51 = vshrl.u32 %v210_v48, 7  ;;  %s3126_s4 = smov 16  }
   0x4   :  { %3706 = sst [smem:[#allocation6_spill]] %s3682_s3  ;;  %v115_v52 = vmul.f32 -10000.0, %v114_v50 }
   0x5   :  { %3707 = sst [smem:[#allocation7_spill]] %s3683_s5  ;;  %s3122_s5 = smov 96   ;;  %v212_v53 = vsub.s32 0, %v211_v51  ;;  %v555_v58 = vsub.s32 1, %v211_v51 }
   0x6   :  { %s3708_s23 = sld [smem:[#allocation3_spill]] }
   0x7   :  { %s3709_s26 = sld [smem:[#allocation4_spill]]  ;;  %v3313_v54 = vrot.slane %v115_v52, %v212_v53 }
   0x8   :  { %s3710_s22 = sld [smem:[#allocation5_spill]] }
   0x9   :  { %s3711_s2 = sld [smem:[#allocation6_spill]] }
   0xa   :  { %s3712_s27 = sld [smem:[#allocation7_spill]] }
   0xc   :  { %v65_v0 = vld [vmem:[%s3708_s23] sm:$0xff]  ;;  %v66_v1 = vld [vmem:[%s3708_s23 + $0x8] sm:$0xff] }
   0xd   :  { %v70_v2 = vsel %vm69_vm0, %v65_v0, 0.0  ;;  %v73_v3 = vsel %vm69_vm0, %v66_v1, 0.0  ;;  %v119_v14 = vld [vmem:[%s3709_s26 + $0x18] sm:$0xff]  ;;  %v118_v15 = vld [vmem:[%s3709_s26 + $0x10] sm:$0xff]  ;;  %v117_v16 = vld [vmem:[%s3709_s26 + $0x8] sm:$0xff] }
   0xe   :  { %71 = vadd.xlane.f32.xlu0 %v70_v2  ;;  %2841 = vmatprep.subr.mxu0 %v119_v14  ;;  %v116_v17 = vld [vmem:[%s3709_s26] sm:$0xff] }
   0xf   :  { %2842 = vmatpush3.msra.mxu0 %v119_v14  ;;  %v2649_v25 = vld [vmem:[%s3710_s22] ss:$0 sm:$0xff] }
  0x10   :  { %2843 = vmatprep.subr.mxu0 %v118_v15  ;;  %v2650_v27 = vld [vmem:[%s3711_s2] ss:$0 sm:$0xff] }
  0x11   :  { %2844 = vmatpush3.msra.mxu0 %v118_v15  ;;  %v2651_v36 = vld [vmem:[%s3712_s27] ss:$0 sm:$0xff] }
  0x12   :  { %74 = vadd.xlane.f32.xlu0 %v73_v3  ;;  %2845 = vmatprep.subr.mxu0 %v117_v16 }
  0x13   :  { %2846 = vmatpush3.msra.mxu0 %v117_v16 }
  0x14   :  { %2847 = vmatprep.subr.mxu0 %v116_v17 }
  0x15   :  { %2848 = vmatpush3.msra.mxu0 %v116_v17 }
  0x16   :  { %2862 = vmatprep.subr.mxu0 %v3119_v34 }
  0x97   :  { %v72_v4 = vpop.xlane.xlu0 %71 }
  0x98   :  { %v77_v5 = vmul.f32 0.03125, %v72_v4 }
  0x9a   :  { %v79_v6 = vsub.f32 %v65_v0, %v77_v5  ;;  %v3319_v0 = vrot.slane %v115_v52, %v555_v58  ;;  %v895_v58 = vld [vmem:[%s3685_s6] sm:$0xff] }
  0x9b   :  { %v75_v7 = vpop.xlane.xlu0 %74 }
  0x9c   :  { %v78_v8 = vmul.f32 0.03125, %v75_v7  ;;  %v81_v9 = vmul.f32 %v79_v6, %v79_v6 }
  0x9e   :  { %v80_v10 = vsub.f32 %v66_v1, %v78_v8  ;;  %v83_v11 = vsel %vm69_vm0, %v81_v9, 0.0 }
  0x9f   :  { %84 = vadd.xlane.f32.xlu1 %v83_v11 }
  0xa0   :  { %v82_v12 = vmul.f32 %v80_v10, %v80_v10 }
  0xa2   :  { %v86_v13 = vsel %vm69_vm0, %v82_v12, 0.0 }
  0xa3   :  { %87 = vadd.xlane.f32.xlu1 %v86_v13 }
 0x128   :  { %v85_v18 = vpop.xlane.xlu1 %84 }
 0x129   :  { %v89_v19 = vmul.f32 0.03125, %v85_v18 }
 0x12b   :  { %v91_v20 = vadd.f32 1e-12, %v89_v19 }
 0x12c   :  { %v88_v21 = vpop.xlane.xlu1 %87 }
 0x12d   :  { %3055 = vrsqrt.f32 %v91_v20  ;;  %v90_v22 = vmul.f32 0.03125, %v88_v21 }
 0x12f   :  { %v92_v23 = vadd.f32 1e-12, %v90_v22 }
 0x131   :  { %3057 = vrsqrt.f32 %v92_v23 }
 0x13a   :  { %v3056_v24 = vpop.eup %3055 }
 0x13b   :  { %v95_v26 = vmul.f32 %v3056_v24, %v79_v6 }
 0x13d   :  { %v103_v28 = vmul.f32 %v2649_v25, %v95_v26 }
 0x13e   :  { %v3058_v29 = vpop.eup %3057 }
 0x13f   :  { %v96_v30 = vmul.f32 %v3058_v29, %v80_v10  ;;  %v3260_v31 = vadd.f32 %v2650_v27, %v103_v28 }
 0x141   :  { %v104_v32 = vmul.f32 %v2649_v25, %v96_v30  ;;  %2849 = vmatprep.mubr.msk.f32.mxu0 %vm69_vm0, %v3260_v31 }
 0x143   :  { %v3264_v33 = vadd.f32 %v2650_v27, %v104_v32 }
 0x145   :  { %2850 = vmatmul.mubr.msk.f32.vlgmr.msra.gmra.mxu0 %vm69_vm0, %v3264_v33 }
 0x146   :  { %2864 = vmatprep.mubr.msk.f32.mxu0 %vm3120_vm1, %v3119_v34 }
 0x205   :  { %v2851_v35 = vpop.f32.mrf.mxu0 }
 0x206   :  { %v3283_v39 = vadd.f32 %v2851_v35, %v2651_v36 }
 0x207   :  { %v199_v37 = vpop.f32.mrf.mxu0 }
 0x208   :  { %v3277_v38 = vadd.f32 %v2651_v36, %v199_v37  ;;  %v209_v41 = vmul.f32 0.25, %v3283_v39 }
 0x20a   :  { %384 = vrot.lane.b32.xlu1 %v3277_v38, %s3121_s28  ;;  %215 = vrot.lane.b32.xlu0 %v3277_v38, %s3122_s5  ;;  %v208_v40 = vmul.f32 0.25, %v3277_v38 }
 0x20e   :  { %725 = vrot.lane.b32.xlu0 %v3283_v39, %s3121_s28  ;;  %382 = vrot.lane.b32.xlu1 %v208_v40, %s3123_s29 }
 0x212   :  { %558 = vrot.lane.b32.xlu1 %v3283_v39, %s3122_s5 }
 0x216   :  { %723 = vrot.lane.b32.xlu1 %v209_v41, %s3123_s29 }
 0x27c   :  { %v385_v42 = vpop.permute.xlu1 %384  ;;  %v216_v43 = vpop.permute.xlu0 %215 }
 0x27d   :  { %2853 = vmatpush3.xpose.msk.msra.mxu1 %vm217_vm2, %v216_v43  ;;  %2863 = vmatpush3.xpose.msk.msra.mxu0 %vm217_vm2, %v385_v42 }
 0x27e   :  { %2872 = vmatprep.subr.mxu0 %v3119_v34  ;;  %2857 = vmatprep.subr.mxu1 %v3119_v34 }
 0x280   :  { %v383_v44 = vpop.permute.xlu1 %382  ;;  %2855 = vmatmul.mubr.msk.f32.vlgmr.msra.gmra.mxu1 %vm217_vm2, %v208_v40  ;;  %v726_v46 = vpop.permute.xlu0 %725 }
 0x281   :  { %2865 = vmatmul.mubr.msk.f32.vlgmr.msra.gmra.mxu0 %vm217_vm2, %v383_v44  ;;  %2859 = vmatprep.mubr.msk.f32.mxu1 %vm3120_vm1, %v3119_v34 }
 0x282   :  { %2874 = vmatprep.mubr.msk.f32.mxu0 %vm3120_vm1, %v3119_v34 }
 0x284   :  { %v559_v45 = vpop.permute.xlu1 %558 }
 0x285   :  { %2873 = vmatpush3.xpose.msk.msra.mxu0 %vm217_vm2, %v559_v45 }
 0x286   :  { %2882 = vmatprep.subr.mxu0 %v3119_v34 }
 0x288   :  { %2875 = vmatmul.mubr.msk.f32.vlgmr.msra.gmra.mxu0 %vm217_vm2, %v209_v41  ;;  %v724_v47 = vpop.permute.xlu1 %723 }
 0x289   :  { %2883 = vmatpush3.xpose.msk.msra.mxu0 %vm217_vm2, %v726_v46  ;;  %2884 = vmatprep.mubr.msk.f32.mxu0 %vm3120_vm1, %v3119_v34 }
 0x28c   :  { %2885 = vmatmul.mubr.msk.f32.vlgmr.msra.gmra.mxu0 %vm217_vm2, %v724_v47 }
 0x340   :  { %v289_v55 = vpop.f32.mrf.mxu1 }
 0x341   :  { %v290_v56 = vadd.f32 %v289_v55, %v3313_v54  ;;  %v456_v57 = vpop.f32.mrf.mxu0  ;;  %v898_v55 = vld [vmem:[%s3685_s6 + $0x18] sm:$0xff] }
 0x342   :  { %v457_v59 = vadd.f32 %v456_v57, %v3313_v54  ;;  %v2856_v60 = vpop.f32.mrf.mxu1  ;;  %2892 = vmatprep.subr.mxu0 %v898_v55  ;;  %v896_v57 = vld [vmem:[%s3685_s6 + $0x8] sm:$0xff] }
 0x343   :  { %v2866_v61 = vpop.f32.mrf.mxu0  ;;  %v294_v62 = vsel %vm293_vm3, %v290_v56, -inf  ;;  %2893 = vmatpush3.msra.mxu0 %v898_v55 }
 0x344   :  { %295 = vmax.xlane.f32.xlu0 %v294_v62  ;;  %v460_v63 = vsel %vm293_vm3, %v457_v59, -inf }
 0x345   :  { %461 = vmax.xlane.f32.xlu1 %v460_v63 }
 0x348   :  { %v631_v1 = vpop.f32.mrf.mxu0 }
 0x349   :  { %v632_v2 = vadd.f32 %v631_v1, %v3319_v0 }
 0x34a   :  { %v2876_v3 = vpop.f32.mrf.mxu0 }
 0x34b   :  { %v635_v4 = vsel %vm293_vm3, %v632_v2, -inf }
 0x34c   :  { %v797_v5 = vpop.f32.mrf.mxu0  ;;  %636 = vmax.xlane.f32.xlu0 %v635_v4 }
 0x34d   :  { %v798_v6 = vadd.f32 %v797_v5, %v3319_v0 }
 0x34e   :  { %v2886_v7 = vpop.f32.mrf.mxu0 }
 0x34f   :  { %v801_v8 = vsel %vm293_vm3, %v798_v6, -inf }
 0x350   :  { %802 = vmax.xlane.f32.xlu0 %v801_v8 }
 0x3cd   :  { %v296_v9 = vpop.xlane.xlu0 %295 }
 0x3ce   :  { %v297_v10 = vsub.f32 %v290_v56, %v296_v9  ;;  %v462_v11 = vpop.xlane.xlu1 %461  ;;  %v897_v56 = vld [vmem:[%s3685_s6 + $0x10] sm:$0xff] }
 0x3cf   :  { %v463_v12 = vsub.f32 %v457_v59, %v462_v11  ;;  %2894 = vmatprep.subr.mxu0 %v897_v56 }
 0x3d0   :  { %v298_v13 = vmul.f32 1.442695, %v297_v10  ;;  %2895 = vmatpush3.msra.mxu0 %v897_v56 }
 0x3d1   :  { %v464_v14 = vmul.f32 1.442695, %v463_v12  ;;  %2896 = vmatprep.subr.mxu0 %v896_v57 }
 0x3d2   :  { %3059 = vpow2.f32 %v298_v13  ;;  %2897 = vmatpush3.msra.mxu0 %v896_v57 }
 0x3d3   :  { %3061 = vpow2.f32 %v464_v14  ;;  %2898 = vmatprep.subr.mxu0 %v895_v58 }
 0x3d4   :  { %2899 = vmatpush3.msra.mxu0 %v895_v58 }
 0x3d5   :  { %v637_v15 = vpop.xlane.xlu0 %636 }
 0x3d6   :  { %v638_v16 = vsub.f32 %v632_v2, %v637_v15  ;;  %v2666_v2 = vld [vmem:[%s3686_s7] ss:$0 sm:$0xff] }
 0x3d8   :  { %v639_v17 = vmul.f32 1.442695, %v638_v16 }
 0x3d9   :  { %v803_v24 = vpop.xlane.xlu0 %802 }
 0x3da   :  { %3063 = vpow2.f32 %v639_v17  ;;  %v804_v25 = vsub.f32 %v798_v6, %v803_v24 }
 0x3dc   :  { %v805_v26 = vmul.f32 1.442695, %v804_v25 }
 0x3de   :  { %3065 = vpow2.f32 %v805_v26 }
 0x3df   :  { %v3060_v18 = vpop.eup %3059 }
 0x3e0   :  { %v3062_v19 = vpop.eup %3061  ;;  %v300_v20 = vsel %vm293_vm3, %v3060_v18, 0.0 }
 0x3e1   :  { %301 = vadd.xlane.f32.xlu0 %v300_v20  ;;  %v466_v21 = vsel %vm293_vm3, %v3062_v19, 0.0  ;;  %v1035_v20 = vld [vmem:[%s3687_s10 + $0x10] sm:$0xff] }
 0x3e2   :  { %467 = vadd.xlane.f32.xlu1 %v466_v21  ;;  %v1034_v21 = vld [vmem:[%s3687_s10 + $0x8] sm:$0xff] }
 0x3e7   :  { %v3064_v22 = vpop.eup %3063 }
 0x3e8   :  { %v641_v23 = vsel %vm293_vm3, %v3064_v22, 0.0 }
 0x3e9   :  { %642 = vadd.xlane.f32.xlu0 %v641_v23 }
 0x3eb   :  { %v3066_v27 = vpop.eup %3065 }
 0x3ec   :  { %v807_v28 = vsel %vm293_vm3, %v3066_v27, 0.0 }
 0x3f3   :  { %471 = vrot.lane.b32.xlu1 %v3277_v38, %s3124_s1 }
 0x3f7   :  { %646 = vrot.lane.b32.xlu1 %v3283_v39, %s3125_s21 }
 0x3ff   :  { %305 = vrot.lane.b32.xlu0 %v3277_v38, %s3125_s21 }
 0x41b   :  { %808 = vadd.xlane.f32.xlu1 %v807_v28 }
 0x42c   :  { %812 = vrot.lane.b32.xlu1 %v3283_v39, %s3124_s1 }
 0x46a   :  { %v302_v29 = vpop.xlane.xlu0 %301 }
 0x46b   :  { %3067 = vrcp.f32 %v302_v29  ;;  %v468_v30 = vpop.xlane.xlu1 %467 }
 0x46c   :  { %3069 = vrcp.f32 %v468_v30  ;;  %v2669_v30 = vld [vmem:[%s3688_s8] ss:$0 sm:$0xff] }
 0x46f   :  { %v472_v37 = vpop.permute.xlu1 %471 }
 0x472   :  { %v643_v32 = vpop.xlane.xlu0 %642 }
 0x473   :  { %3071 = vrcp.f32 %v643_v32  ;;  %v647_v41 = vpop.permute.xlu1 %646 }
 0x476   :  { %v306_v35 = vpop.permute.xlu0 %305 }
 0x477   :  { %2858 = vmatpush3.msra.mxu1 %v306_v35  ;;  %v2670_v35 = vld [vmem:[%s3689_s9] ss:$0 sm:$0xff] }
 0x478   :  { %v3068_v36 = vpop.eup %3067  ;;  %2867 = vmatprep.subr.mxu1 %v3119_v34 }
 0x479   :  { %v304_v38 = vmul.f32 %v3068_v36, %v3060_v18  ;;  %v3070_v40 = vpop.eup %3069 }
 0x47a   :  { %v470_v39 = vmul.f32 %v3070_v40, %v3062_v19 }
 0x47b   :  { %2860 = vmatmul.mubr.msk.f32.vlgmr.msra.gmra.mxu1 %vm293_vm3, %v304_v38 }
 0x47c   :  { %2868 = vmatpush3.msra.mxu1 %v472_v37  ;;  %2869 = vmatprep.mubr.msk.f32.mxu1 %vm3120_vm1, %v3119_v34 }
 0x47d   :  { %2877 = vmatprep.subr.mxu1 %v3119_v34 }
 0x47f   :  { %2870 = vmatmul.mubr.msk.f32.vlgmr.msra.gmra.mxu1 %vm293_vm3, %v470_v39 }
 0x480   :  { %v3072_v42 = vpop.eup %3071  ;;  %2878 = vmatpush3.msra.mxu1 %v647_v41  ;;  %2879 = vmatprep.mubr.msk.f32.mxu1 %vm3120_vm1, %v3119_v34 }
 0x481   :  { %v645_v43 = vmul.f32 %v3072_v42, %v3064_v22  ;;  %2887 = vmatprep.subr.mxu1 %v3119_v34  ;;  %v1033_v22 = vld [vmem:[%s3687_s10] sm:$0xff]  ;;  %v1150_v42 = vld [vmem:[%s3690_s12 + $0x38] sm:$0xff] }
 0x482   :  { %2914 = vmatprep.subr.mxu0 %v1150_v42 }
 0x483   :  { %2880 = vmatmul.mubr.msk.f32.vlgmr.msra.gmra.mxu1 %vm293_vm3, %v645_v43  ;;  %v1149_v43 = vld [vmem:[%s3690_s12 + $0x30] sm:$0xff] }
 0x484   :  { %2889 = vmatprep.mubr.msk.f32.mxu1 %vm3120_vm1, %v3119_v34 }
 0x4a4   :  { %v809_v44 = vpop.xlane.xlu1 %808 }
 0x4a5   :  { %3073 = vrcp.f32 %v809_v44  ;;  %v1148_v44 = vld [vmem:[%s3690_s12 + $0x28] sm:$0xff] }
 0x4a8   :  { %v813_v45 = vpop.permute.xlu1 %812 }
 0x4a9   :  { %2888 = vmatpush3.msra.mxu1 %v813_v45  ;;  %v1147_v45 = vld [vmem:[%s3690_s12 + $0x20] sm:$0xff] }
 0x4b2   :  { %v3074_v46 = vpop.eup %3073 }
 0x4b3   :  { %v811_v47 = vmul.f32 %v3074_v46, %v3066_v27  ;;  %v1146_v46 = vld [vmem:[%s3690_s12 + $0x18] sm:$0xff] }
 0x4b5   :  { %2890 = vmatmul.mubr.msk.f32.vlgmr.msra.gmra.mxu1 %vm293_vm3, %v811_v47  ;;  %v1145_v47 = vld [vmem:[%s3690_s12 + $0x10] sm:$0xff] }
 0x53b   :  { %v377_v48 = vpop.f32.mrf.mxu1 }
 0x53c   :  { %381 = vst.msk [vmem:[#allocation2] sm:$0xff] %vm217_vm2, %v377_v48  ;;  %v1144_v48 = vld [vmem:[%s3690_s12 + $0x8] sm:$0xff] }
 0x53d   :  { %v2861_v49 = vpop.f32.mrf.mxu1 }
 0x53e   :  { %v1143_v49 = vld [vmem:[%s3690_s12] sm:$0xff] }
 0x53f   :  { %v543_v50 = vpop.f32.mrf.mxu1 }
 0x540   :  { %548 = vrot.lane.b32.xlu0 %v543_v50, %s3126_s4  ;;  %v2671_v50 = vld [vmem:[%s3691_s11] ss:$0 sm:$0xff] }
 0x541   :  { %v2871_v51 = vpop.f32.mrf.mxu1 }
 0x543   :  { %v718_v52 = vpop.f32.mrf.mxu1 }
 0x544   :  { %722 = vst.msk [vmem:[#allocation2 + $0x8] sm:$0xff] %vm217_vm2, %v718_v52 }
 0x545   :  { %v2881_v53 = vpop.f32.mrf.mxu1 }
 0x575   :  { %v884_v59 = vpop.f32.mrf.mxu1 }
 0x576   :  { %889 = vrot.lane.b32.xlu1 %v884_v59, %s3126_s4 }
 0x577   :  { %v2891_v60 = vpop.f32.mrf.mxu1 }
 0x5b2   :  { %v549_v61 = vpop.permute.xlu0 %548 }
 0x5b3   :  { %552 = vst.msk [vmem:[#allocation2] sm:$0xff] %vm551_vm4, %v549_v61 }
 0x5ba   :  { %v893_v62 = vld [vmem:[#allocation2] sm:$0xff] }
 0x5bb   :  { %2900 = vmatprep.mubr.msk.f32.mxu0 %vm69_vm0, %v893_v62 }
 0x5e8   :  { %v890_v63 = vpop.permute.xlu1 %889 }
 0x5e9   :  { %892 = vst.msk [vmem:[#allocation2 + $0x8] sm:$0xff] %vm551_vm4, %v890_v63 }
 0x5f0   :  { %v894_v1 = vld [vmem:[#allocation2 + $0x8] sm:$0xff] }
 0x5f1   :  { %2901 = vmatmul.mubr.msk.f32.vlgmr.msra.gmra.mxu0 %vm69_vm0, %v894_v1 }
 0x5f2   :  { %2915 = vmatpush3.msra.mxu0 %v1150_v42  ;;  %v2677_v42 = vld [vmem:[%s3693_s14] ss:$0 sm:$0xff] }
 0x5f3   :  { %2916 = vmatprep.subr.mxu0 %v1149_v43 }
 0x5f4   :  { %2917 = vmatpush3.msra.mxu0 %v1149_v43 }
 0x5f5   :  { %2918 = vmatprep.subr.mxu0 %v1148_v44 }
 0x5f6   :  { %2919 = vmatpush3.msra.mxu0 %v1148_v44 }
 0x5f7   :  { %2920 = vmatprep.subr.mxu0 %v1147_v45 }
 0x5f8   :  { %2921 = vmatpush3.msra.mxu0 %v1147_v45 }
 0x5f9   :  { %2922 = vmatprep.subr.mxu0 %v1146_v46 }
 0x5fa   :  { %2923 = vmatpush3.msra.mxu0 %v1146_v46 }
 0x5fb   :  { %2924 = vmatprep.subr.mxu0 %v1145_v47 }
 0x5fc   :  { %2925 = vmatpush3.msra.mxu0 %v1145_v47  ;;  %v2678_v47 = vld [vmem:[%s3694_s15] ss:$0 sm:$0xff] }
 0x5fd   :  { %2926 = vmatprep.subr.mxu0 %v1144_v48 }
 0x5fe   :  { %2927 = vmatpush3.msra.mxu0 %v1144_v48 }
 0x5ff   :  { %2928 = vmatprep.subr.mxu0 %v1143_v49 }
 0x600   :  { %2929 = vmatpush3.msra.mxu0 %v1143_v49 }
 0x601   :  { %2954 = vmatprep.subr.mxu0 %v3119_v34 }
 0x6b1   :  { %v2902_v3 = vpop.f32.mrf.mxu0 }
 0x6b2   :  { %v984_v4 = vadd.f32 %v2902_v3, %v2666_v2 }
 0x6b3   :  { %v978_v5 = vpop.f32.mrf.mxu0 }
 0x6b4   :  { %v979_v6 = vadd.f32 %v2666_v2, %v978_v5  ;;  %v988_v7 = vadd.f32 %v984_v4, %v3264_v33 }
 0x6b6   :  { %v994_v8 = vsel %vm69_vm0, %v988_v7, 0.0  ;;  %v987_v9 = vadd.f32 %v979_v6, %v3260_v31  ;;  %v1036_v31 = vld [vmem:[%s3687_s10 + $0x18] sm:$0xff] }
 0x6b7   :  { %995 = vadd.xlane.f32.xlu1 %v994_v8  ;;  %2903 = vmatprep.subr.mxu1 %v1036_v31 }
 0x6b8   :  { %v991_v10 = vsel %vm69_vm0, %v987_v9, 0.0  ;;  %2904 = vmatpush3.msra.mxu1 %v1036_v31 }
 0x6b9   :  { %992 = vadd.xlane.f32.xlu0 %v991_v10  ;;  %2905 = vmatprep.subr.mxu1 %v1035_v20 }
 0x6ba   :  { %2906 = vmatpush3.msra.mxu1 %v1035_v20 }
 0x6bb   :  { %2907 = vmatprep.subr.mxu1 %v1034_v21 }
 0x6bc   :  { %2908 = vmatpush3.msra.mxu1 %v1034_v21 }
 0x6bd   :  { %2909 = vmatprep.subr.mxu1 %v1033_v22 }
 0x6be   :  { %2910 = vmatpush3.msra.mxu1 %v1033_v22 }
 0x740   :  { %v996_v11 = vpop.xlane.xlu1 %995 }
 0x741   :  { %v998_v12 = vmul.f32 0.03125, %v996_v11  ;;  %v2674_v11 = vld [vmem:[%s3692_s13] ss:$0 sm:$0xff] }
 0x742   :  { %v993_v13 = vpop.xlane.xlu0 %992 }
 0x743   :  { %v997_v14 = vmul.f32 0.03125, %v993_v13  ;;  %v1000_v15 = vsub.f32 %v988_v7, %v998_v12 }
 0x745   :  { %v999_v16 = vsub.f32 %v987_v9, %v997_v14  ;;  %v1002_v19 = vmul.f32 %v1000_v15, %v1000_v15 }
 0x747   :  { %v1001_v17 = vmul.f32 %v999_v16, %v999_v16  ;;  %v1006_v33 = vsel %vm69_vm0, %v1002_v19, 0.0 }
 0x749   :  { %v1003_v18 = vsel %vm69_vm0, %v1001_v17, 0.0 }
 0x74a   :  { %1004 = vadd.xlane.f32.xlu0 %v1003_v18 }
 0x74e   :  { %1007 = vadd.xlane.f32.xlu0 %v1006_v33 }
 0x7d3   :  { %v1005_v23 = vpop.xlane.xlu0 %1004 }
 0x7d4   :  { %v1009_v24 = vmul.f32 0.03125, %v1005_v23 }
 0x7d6   :  { %v1011_v25 = vadd.f32 1e-12, %v1009_v24 }
 0x7d7   :  { %v1008_v26 = vpop.xlane.xlu0 %1007 }
 0x7d8   :  { %3075 = vrsqrt.f32 %v1011_v25  ;;  %v1010_v27 = vmul.f32 0.03125, %v1008_v26 }
 0x7da   :  { %v1012_v28 = vadd.f32 1e-12, %v1010_v27 }
 0x7dc   :  { %3077 = vrsqrt.f32 %v1012_v28  ;;  %v2682_v28 = vld [vmem:[%s3709_s26 + $0x38] sm:$0xff] }
 0x7dd   :  { %2933 = vmatprep.subr.mxu1 %v2682_v28 }
 0x7e5   :  { %v3076_v29 = vpop.eup %3075 }
 0x7e6   :  { %v1015_v32 = vmul.f32 %v3076_v29, %v999_v16  ;;  %v2681_v29 = vld [vmem:[%s3709_s26 + $0x30] sm:$0xff] }
 0x7e8   :  { %v1023_v36 = vmul.f32 %v2669_v30, %v1015_v32  ;;  %v2679_v32 = vld [vmem:[%s3709_s26 + $0x20] sm:$0xff] }
 0x7e9   :  { %v3078_v37 = vpop.eup %3077 }
 0x7ea   :  { %v1016_v38 = vmul.f32 %v3078_v37, %v1000_v15  ;;  %v3397_v40 = vadd.f32 %v2670_v35, %v1023_v36 }
 0x7ec   :  { %v1024_v39 = vmul.f32 %v2669_v30, %v1016_v38  ;;  %2911 = vmatprep.mubr.msk.f32.mxu1 %vm69_vm0, %v3397_v40  ;;  %v2680_v30 = vld [vmem:[%s3709_s26 + $0x28] sm:$0xff] }
 0x7ee   :  { %v3401_v41 = vadd.f32 %v2670_v35, %v1024_v39 }
 0x7f0   :  { %2912 = vmatmul.mubr.msk.f32.vlgmr.msra.gmra.mxu1 %vm69_vm0, %v3401_v41 }
 0x7f1   :  { %2934 = vmatpush3.msra.mxu1 %v2682_v28 }
 0x7f2   :  { %2935 = vmatprep.subr.mxu1 %v2681_v29 }
 0x7f3   :  { %2936 = vmatpush3.msra.mxu1 %v2681_v29 }
 0x7f4   :  { %2937 = vmatprep.subr.mxu1 %v2680_v30 }
 0x7f5   :  { %2938 = vmatpush3.msra.mxu1 %v2680_v30 }
 0x7f6   :  { %2939 = vmatprep.subr.mxu1 %v2679_v32 }
 0x7f7   :  { %2940 = vmatpush3.msra.mxu1 %v2679_v32 }
 0x7f8   :  { %2944 = vmatprep.subr.mxu1 %v3119_v34 }
 0x8b0   :  { %v2913_v51 = vpop.f32.mrf.mxu1 }
 0x8b1   :  { %v1122_v52 = vadd.f32 %v2913_v51, %v2671_v50 }
 0x8b2   :  { %v1116_v53 = vpop.f32.mrf.mxu1 }
 0x8b3   :  { %v1126_v55 = vmul.f32 %v1122_v52, %v1122_v52  ;;  %v1117_v56 = vadd.f32 %v2671_v50, %v1116_v53 }
 0x8b5   :  { %v1128_v57 = vmul.f32 %v1126_v55, %v1122_v52  ;;  %v1125_v58 = vmul.f32 %v1117_v56, %v1117_v56 }
 0x8b7   :  { %v1130_v59 = vmul.f32 0.044715, %v1128_v57  ;;  %v1127_v60 = vmul.f32 %v1125_v58, %v1117_v56 }
 0x8b9   :  { %v1132_v61 = vadd.f32 %v1130_v59, %v1122_v52  ;;  %v1129_v62 = vmul.f32 0.044715, %v1127_v60 }
 0x8bb   :  { %v1134_v63 = vmul.f32 0.7978846, %v1132_v61  ;;  %v1131_v1 = vadd.f32 %v1129_v62, %v1117_v56 }
 0x8bd   :  { %3079 = vtanh.f32 %v1134_v63  ;;  %v1133_v2 = vmul.f32 0.7978846, %v1131_v1 }
 0x8bf   :  { %3081 = vtanh.f32 %v1133_v2 }
 0x8ca   :  { %v3080_v3 = vpop.eup %3079 }
 0x8cb   :  { %v1138_v4 = vadd.f32 1.0, %v3080_v3 }
 0x8cc   :  { %v3082_v5 = vpop.eup %3081 }
 0x8cd   :  { %v1137_v6 = vadd.f32 1.0, %v3082_v5  ;;  %v1140_v7 = vmul.f32 0.5, %v1138_v4 }
 0x8cf   :  { %v1139_v8 = vmul.f32 0.5, %v1137_v6  ;;  %v1142_v10 = vmul.f32 %v1140_v7, %v1122_v52  ;;  %v2684_v52 = vld [vmem:[%s3712_s27 + $0x1] ss:$0 sm:$0xff] }
 0x8d1   :  { %v1141_v9 = vmul.f32 %v1139_v8, %v1117_v56 }
 0x8d3   :  { %2930 = vmatprep.mubr.msk.f32.mxu0 %vm1158_vm5, %v1141_v9 }
 0x8d4   :  { %2931 = vmatmul.mubr.msk.f32.vlgmr.msra.gmra.mxu0 %vm1158_vm5, %v1142_v10 }
 0x8d5   :  { %2956 = vmatprep.mubr.msk.f32.mxu0 %vm3120_vm1, %v3119_v34 }
 0x994   :  { %v2932_v12 = vpop.f32.mrf.mxu0 }
 0x995   :  { %v1237_v13 = vadd.f32 %v2932_v12, %v2674_v11 }
 0x996   :  { %v1231_v14 = vpop.f32.mrf.mxu0 }
 0x997   :  { %v1232_v15 = vadd.f32 %v2674_v11, %v1231_v14  ;;  %v1241_v16 = vadd.f32 %v1237_v13, %v3401_v41 }
 0x999   :  { %v1247_v17 = vsel %vm69_vm0, %v1241_v16, 0.0  ;;  %v1240_v18 = vadd.f32 %v1232_v15, %v3397_v40 }
 0x99a   :  { %1248 = vadd.xlane.f32.xlu1 %v1247_v17 }
 0x99b   :  { %v1244_v19 = vsel %vm69_vm0, %v1240_v18, 0.0 }
 0x99c   :  { %1245 = vadd.xlane.f32.xlu0 %v1244_v19 }
 0xa23   :  { %v1249_v33 = vpop.xlane.xlu1 %1248 }
 0xa24   :  { %v1251_v31 = vmul.f32 0.03125, %v1249_v33 }
 0xa25   :  { %v1246_v20 = vpop.xlane.xlu0 %1245 }
 0xa26   :  { %v1253_v21 = vsub.f32 %v1241_v16, %v1251_v31  ;;  %v1250_v22 = vmul.f32 0.03125, %v1246_v20 }
 0xa28   :  { %v1252_v23 = vsub.f32 %v1240_v18, %v1250_v22  ;;  %v1255_v24 = vmul.f32 %v1253_v21, %v1253_v21 }
 0xa2a   :  { %v1259_v25 = vsel %vm69_vm0, %v1255_v24, 0.0  ;;  %v1254_v26 = vmul.f32 %v1252_v23, %v1252_v23 }
 0xa2b   :  { %1260 = vadd.xlane.f32.xlu1 %v1259_v25 }
 0xa2c   :  { %v1256_v27 = vsel %vm69_vm0, %v1254_v26, 0.0 }
 0xa2d   :  { %1257 = vadd.xlane.f32.xlu0 %v1256_v27 }
 0xab4   :  { %v1261_v35 = vpop.xlane.xlu1 %1260 }
 0xab5   :  { %v1263_v36 = vmul.f32 0.03125, %v1261_v35 }
 0xab6   :  { %v1258_v37 = vpop.xlane.xlu0 %1257 }
 0xab7   :  { %v1265_v38 = vadd.f32 1e-12, %v1263_v36  ;;  %v1262_v40 = vmul.f32 0.03125, %v1258_v37 }
 0xab9   :  { %3083 = vrsqrt.f32 %v1265_v38  ;;  %v1264_v39 = vadd.f32 1e-12, %v1262_v40 }
 0xabb   :  { %3085 = vrsqrt.f32 %v1264_v39 }
 0xac6   :  { %v3084_v41 = vpop.eup %3083 }
 0xac7   :  { %v1269_v43 = vmul.f32 %v3084_v41, %v1253_v21 }
 0xac8   :  { %v3086_v44 = vpop.eup %3085 }
 0xac9   :  { %v1268_v45 = vmul.f32 %v3086_v44, %v1252_v23  ;;  %v1277_v46 = vmul.f32 %v2677_v42, %v1269_v43 }
 0xacb   :  { %v1276_v48 = vmul.f32 %v2677_v42, %v1268_v45  ;;  %v3467_v50 = vadd.f32 %v2678_v47, %v1277_v46 }
 0xacd   :  { %v3465_v49 = vadd.f32 %v2678_v47, %v1276_v48 }
 0xacf   :  { %2941 = vmatprep.mubr.msk.f32.mxu1 %vm69_vm0, %v3465_v49 }
 0xad0   :  { %2942 = vmatmul.mubr.msk.f32.vlgmr.msra.gmra.mxu1 %vm69_vm0, %v3467_v50 }
 0xad1   :  { %2946 = vmatprep.mubr.msk.f32.mxu1 %vm3120_vm1, %v3119_v34 }
 0xb90   :  { %v2943_v51 = vpop.f32.mrf.mxu1 }
 0xb91   :  { %v3484_v56 = vadd.f32 %v2943_v51, %v2684_v52 }
 0xb92   :  { %v1371_v53 = vpop.f32.mrf.mxu1 }
 0xb93   :  { %v3478_v55 = vadd.f32 %v2684_v52, %v1371_v53  ;;  %v1381_v58 = vmul.f32 0.25, %v3484_v56 }
 0xb95   :  { %1550 = vrot.lane.b32.xlu1 %v3478_v55, %s3121_s28  ;;  %1383 = vrot.lane.b32.xlu0 %v3478_v55, %s3122_s5  ;;  %v1380_v57 = vmul.f32 0.25, %v3478_v55 }
 0xb99   :  { %1886 = vrot.lane.b32.xlu0 %v3484_v56, %s3121_s28  ;;  %1548 = vrot.lane.b32.xlu1 %v1380_v57, %s3123_s29 }
 0xb9d   :  { %1719 = vrot.lane.b32.xlu1 %v3484_v56, %s3122_s5 }
 0xba1   :  { %1884 = vrot.lane.b32.xlu1 %v1381_v58, %s3123_s29 }
 0xc07   :  { %v1551_v59 = vpop.permute.xlu1 %1550  ;;  %v1384_v60 = vpop.permute.xlu0 %1383 }
 0xc08   :  { %2945 = vmatpush3.xpose.msk.msra.mxu1 %vm217_vm2, %v1384_v60  ;;  %2955 = vmatpush3.xpose.msk.msra.mxu0 %vm217_vm2, %v1551_v59 }
 0xc09   :  { %2964 = vmatprep.subr.mxu0 %v3119_v34  ;;  %2949 = vmatprep.subr.mxu1 %v3119_v34 }
 0xc0b   :  { %v1549_v61 = vpop.permute.xlu1 %1548  ;;  %2947 = vmatmul.mubr.msk.f32.vlgmr.msra.gmra.mxu1 %vm217_vm2, %v1380_v57  ;;  %v1887_v63 = vpop.permute.xlu0 %1886 }
 0xc0c   :  { %2957 = vmatmul.mubr.msk.f32.vlgmr.msra.gmra.mxu0 %vm217_vm2, %v1549_v61  ;;  %2951 = vmatprep.mubr.msk.f32.mxu1 %vm3120_vm1, %v3119_v34  ;;  %v2702_v61 = vld [vmem:[%s3685_s6 + $0x38] sm:$0xff] }
 0xc0d   :  { %2966 = vmatprep.mubr.msk.f32.mxu0 %vm3120_vm1, %v3119_v34 }
 0xc0f   :  { %v1720_v62 = vpop.permute.xlu1 %1719 }
 0xc10   :  { %2965 = vmatpush3.xpose.msk.msra.mxu0 %vm217_vm2, %v1720_v62  ;;  %v2701_v62 = vld [vmem:[%s3685_s6 + $0x30] sm:$0xff] }
 0xc11   :  { %2974 = vmatprep.subr.mxu0 %v3119_v34 }
 0xc13   :  { %2967 = vmatmul.mubr.msk.f32.vlgmr.msra.gmra.mxu0 %vm217_vm2, %v1381_v58  ;;  %v1885_v1 = vpop.permute.xlu1 %1884 }
 0xc14   :  { %2975 = vmatpush3.xpose.msk.msra.mxu0 %vm217_vm2, %v1887_v63  ;;  %2976 = vmatprep.mubr.msk.f32.mxu0 %vm3120_vm1, %v3119_v34  ;;  %v2700_v63 = vld [vmem:[%s3685_s6 + $0x28] sm:$0xff] }
 0xc15   :  { %2984 = vmatprep.subr.mxu0 %v2702_v61 }
 0xc17   :  { %2977 = vmatmul.mubr.msk.f32.vlgmr.msra.gmra.mxu0 %vm217_vm2, %v1885_v1  ;;  %v2699_v1 = vld [vmem:[%s3685_s6 + $0x20] sm:$0xff] }
 0xc18   :  { %2985 = vmatpush3.msra.mxu0 %v2702_v61 }
 0xc19   :  { %2986 = vmatprep.subr.mxu0 %v2701_v62 }
 0xc1a   :  { %2987 = vmatpush3.msra.mxu0 %v2701_v62 }
 0xc1b   :  { %2988 = vmatprep.subr.mxu0 %v2700_v63 }
 0xc1c   :  { %2989 = vmatpush3.msra.mxu0 %v2700_v63 }
 0xc1d   :  { %2990 = vmatprep.subr.mxu0 %v2699_v1 }
 0xc1e   :  { %2991 = vmatpush3.msra.mxu0 %v2699_v1 }
 0xccb   :  { %v1456_v2 = vpop.f32.mrf.mxu1 }
 0xccc   :  { %v1457_v3 = vadd.f32 %v1456_v2, %v3313_v54  ;;  %v1622_v4 = vpop.f32.mrf.mxu0 }
 0xccd   :  { %v1623_v5 = vadd.f32 %v1622_v4, %v3313_v54  ;;  %v2948_v6 = vpop.f32.mrf.mxu1 }
 0xcce   :  { %v2958_v7 = vpop.f32.mrf.mxu0  ;;  %v1460_v8 = vsel %vm293_vm3, %v1457_v3, -inf }
 0xccf   :  { %1461 = vmax.xlane.f32.xlu0 %v1460_v8  ;;  %v1626_v9 = vsel %vm293_vm3, %v1623_v5, -inf  ;;  %v2704_v8 = vld [vmem:[%s3686_s7 + $0x1] ss:$0 sm:$0xff] }
 0xcd0   :  { %1627 = vmax.xlane.f32.xlu1 %v1626_v9 }
 0xcd3   :  { %v1792_v10 = vpop.f32.mrf.mxu0 }
 0xcd4   :  { %v1793_v11 = vadd.f32 %v1792_v10, %v3319_v0 }
 0xcd5   :  { %v2968_v12 = vpop.f32.mrf.mxu0 }
 0xcd6   :  { %v1796_v13 = vsel %vm293_vm3, %v1793_v11, -inf }
 0xcd7   :  { %v1958_v14 = vpop.f32.mrf.mxu0  ;;  %1797 = vmax.xlane.f32.xlu0 %v1796_v13 }
 0xcd8   :  { %v1959_v15 = vadd.f32 %v1958_v14, %v3319_v0 }
 0xcd9   :  { %v2978_v16 = vpop.f32.mrf.mxu0 }
 0xcda   :  { %v1962_v54 = vsel %vm293_vm3, %v1959_v15, -inf }
 0xcdb   :  { %1963 = vmax.xlane.f32.xlu0 %v1962_v54 }
 0xd58   :  { %v1462_v17 = vpop.xlane.xlu0 %1461 }
 0xd59   :  { %v1463_v18 = vsub.f32 %v1457_v3, %v1462_v17  ;;  %v1628_v19 = vpop.xlane.xlu1 %1627 }
 0xd5a   :  { %v1629_v33 = vsub.f32 %v1623_v5, %v1628_v19 }
 0xd5b   :  { %v1464_v31 = vmul.f32 1.442695, %v1463_v18 }
 0xd5c   :  { %v1630_v20 = vmul.f32 1.442695, %v1629_v33 }
 0xd5d   :  { %3087 = vpow2.f32 %v1464_v31 }
 0xd5e   :  { %3089 = vpow2.f32 %v1630_v20 }
 0xd60   :  { %v1798_v21 = vpop.xlane.xlu0 %1797 }
 0xd61   :  { %v1799_v22 = vsub.f32 %v1793_v11, %v1798_v21 }
 0xd63   :  { %v1800_v23 = vmul.f32 1.442695, %v1799_v22 }
 0xd64   :  { %v1964_v29 = vpop.xlane.xlu0 %1963 }
 0xd65   :  { %3091 = vpow2.f32 %v1800_v23  ;;  %v1965_v30 = vsub.f32 %v1959_v15, %v1964_v29  ;;  %v2713_v23 = vld [vmem:[%s3687_s10 + $0x30] sm:$0xff] }
 0xd67   :  { %v1966_v32 = vmul.f32 1.442695, %v1965_v30 }
 0xd69   :  { %3093 = vpow2.f32 %v1966_v32 }
 0xd6a   :  { %v3088_v24 = vpop.eup %3087 }
 0xd6b   :  { %v3090_v25 = vpop.eup %3089  ;;  %v1466_v0 = vsel %vm293_vm3, %v3088_v24, 0.0 }
 0xd6c   :  { %1467 = vadd.xlane.f32.xlu0 %v1466_v0  ;;  %v1632_v26 = vsel %vm293_vm3, %v3090_v25, 0.0 }
 0xd6d   :  { %1633 = vadd.xlane.f32.xlu1 %v1632_v26 }
 0xd72   :  { %v3092_v27 = vpop.eup %3091 }
 0xd73   :  { %v1802_v28 = vsel %vm293_vm3, %v3092_v27, 0.0 }
 0xd74   :  { %1803 = vadd.xlane.f32.xlu0 %v1802_v28 }
 0xd76   :  { %v3094_v35 = vpop.eup %3093 }
 0xd77   :  { %v1968_v36 = vsel %vm293_vm3, %v3094_v35, 0.0 }
 0xd7e   :  { %1637 = vrot.lane.b32.xlu1 %v3478_v55, %s3124_s1 }
 0xd82   :  { %1807 = vrot.lane.b32.xlu1 %v3484_v56, %s3125_s21 }
 0xd8a   :  { %1471 = vrot.lane.b32.xlu0 %v3478_v55, %s3125_s21 }
 0xda6   :  { %1969 = vadd.xlane.f32.xlu1 %v1968_v36 }
 0xdb7   :  { %1973 = vrot.lane.b32.xlu1 %v3484_v56, %s3124_s1 }
 0xdf5   :  { %v1468_v37 = vpop.xlane.xlu0 %1467 }
 0xdf6   :  { %3095 = vrcp.f32 %v1468_v37  ;;  %v1634_v38 = vpop.xlane.xlu1 %1633  ;;  %v2710_v37 = vld [vmem:[%s3689_s9 + $0x1] ss:$0 sm:$0xff] }
 0xdf7   :  { %3097 = vrcp.f32 %v1634_v38 }
 0xdfa   :  { %v1638_v42 = vpop.permute.xlu1 %1637 }
 0xdfd   :  { %v1804_v40 = vpop.xlane.xlu0 %1803 }
 0xdfe   :  { %3099 = vrcp.f32 %v1804_v40  ;;  %v1808_v46 = vpop.permute.xlu1 %1807 }
 0xe01   :  { %v1472_v39 = vpop.permute.xlu0 %1471 }
 0xe02   :  { %2950 = vmatpush3.msra.mxu1 %v1472_v39 }
 0xe03   :  { %v3096_v41 = vpop.eup %3095  ;;  %2959 = vmatprep.subr.mxu1 %v3119_v34 }
 0xe04   :  { %v1470_v43 = vmul.f32 %v3096_v41, %v3088_v24  ;;  %v3098_v44 = vpop.eup %3097  ;;  %v2712_v24 = vld [vmem:[%s3687_s10 + $0x28] sm:$0xff] }
 0xe05   :  { %v1636_v45 = vmul.f32 %v3098_v44, %v3090_v25  ;;  %v2711_v25 = vld [vmem:[%s3687_s10 + $0x20] sm:$0xff]  ;;  %v2726_v44 = vld [vmem:[%s3690_s12 + $0x78] sm:$0xff] }
 0xe06   :  { %2952 = vmatmul.mubr.msk.f32.vlgmr.msra.gmra.mxu1 %vm293_vm3, %v1470_v43  ;;  %3006 = vmatprep.subr.mxu0 %v2726_v44 }
 0xe07   :  { %2960 = vmatpush3.msra.mxu1 %v1638_v42  ;;  %2961 = vmatprep.mubr.msk.f32.mxu1 %vm3120_vm1, %v3119_v34 }
 0xe08   :  { %2969 = vmatprep.subr.mxu1 %v3119_v34 }
 0xe0a   :  { %2962 = vmatmul.mubr.msk.f32.vlgmr.msra.gmra.mxu1 %vm293_vm3, %v1636_v45  ;;  %v2725_v45 = vld [vmem:[%s3690_s12 + $0x70] sm:$0xff] }
 0xe0b   :  { %v3100_v47 = vpop.eup %3099  ;;  %2970 = vmatpush3.msra.mxu1 %v1808_v46  ;;  %2971 = vmatprep.mubr.msk.f32.mxu1 %vm3120_vm1, %v3119_v34  ;;  %v2724_v46 = vld [vmem:[%s3690_s12 + $0x68] sm:$0xff] }
 0xe0c   :  { %v1806_v48 = vmul.f32 %v3100_v47, %v3092_v27  ;;  %2979 = vmatprep.subr.mxu1 %v3119_v34  ;;  %v2723_v47 = vld [vmem:[%s3690_s12 + $0x60] sm:$0xff] }
 0xe0e   :  { %2972 = vmatmul.mubr.msk.f32.vlgmr.msra.gmra.mxu1 %vm293_vm3, %v1806_v48  ;;  %v2722_v48 = vld [vmem:[%s3690_s12 + $0x58] sm:$0xff] }
 0xe0f   :  { %2981 = vmatprep.mubr.msk.f32.mxu1 %vm3120_vm1, %v3119_v34 }
 0xe2f   :  { %v1970_v51 = vpop.xlane.xlu1 %1969 }
 0xe30   :  { %3101 = vrcp.f32 %v1970_v51  ;;  %v2721_v51 = vld [vmem:[%s3690_s12 + $0x50] sm:$0xff] }
 0xe33   :  { %v1974_v52 = vpop.permute.xlu1 %1973 }
 0xe34   :  { %2980 = vmatpush3.msra.mxu1 %v1974_v52  ;;  %v2720_v52 = vld [vmem:[%s3690_s12 + $0x48] sm:$0xff] }
 0xe3d   :  { %v3102_v53 = vpop.eup %3101 }
 0xe3e   :  { %v1972_v55 = vmul.f32 %v3102_v53, %v3094_v35  ;;  %v2709_v35 = vld [vmem:[%s3688_s8 + $0x1] ss:$0 sm:$0xff] }
 0xe3f   :  { %v2719_v53 = vld [vmem:[%s3690_s12 + $0x40] sm:$0xff] }
 0xe40   :  { %2982 = vmatmul.mubr.msk.f32.vlgmr.msra.gmra.mxu1 %vm293_vm3, %v1972_v55  ;;  %v2716_v55 = vld [vmem:[%s3691_s11 + $0x1] ss:$0 sm:$0xff] }
 0xec6   :  { %v1543_v56 = vpop.f32.mrf.mxu1 }
 0xec7   :  { %1547 = vst.msk [vmem:[#allocation2] sm:$0xff] %vm217_vm2, %v1543_v56 }
 0xec8   :  { %v2953_v57 = vpop.f32.mrf.mxu1 }
 0xeca   :  { %v1709_v58 = vpop.f32.mrf.mxu1 }
 0xecb   :  { %1714 = vrot.lane.b32.xlu0 %v1709_v58, %s3126_s4 }
 0xecc   :  { %v2963_v59 = vpop.f32.mrf.mxu1 }
 0xece   :  { %v1879_v60 = vpop.f32.mrf.mxu1 }
 0xecf   :  { %1883 = vst.msk [vmem:[#allocation2 + $0x8] sm:$0xff] %vm217_vm2, %v1879_v60 }
 0xed0   :  { %v2973_v34 = vpop.f32.mrf.mxu1 }
 0xf00   :  { %v2045_v2 = vpop.f32.mrf.mxu1 }
 0xf01   :  { %2050 = vrot.lane.b32.xlu1 %v2045_v2, %s3126_s4 }
 0xf02   :  { %v2983_v3 = vpop.f32.mrf.mxu1 }
 0xf3d   :  { %v1715_v4 = vpop.permute.xlu0 %1714 }
 0xf3e   :  { %1717 = vst.msk [vmem:[#allocation2] sm:$0xff] %vm551_vm4, %v1715_v4 }
 0xf45   :  { %v2054_v5 = vld [vmem:[#allocation2] sm:$0xff] }
 0xf46   :  { %2992 = vmatprep.mubr.msk.f32.mxu0 %vm69_vm0, %v2054_v5 }
 0xf73   :  { %v2051_v6 = vpop.permute.xlu1 %2050 }
 0xf74   :  { %2053 = vst.msk [vmem:[#allocation2 + $0x8] sm:$0xff] %vm551_vm4, %v2051_v6 }
 0xf7b   :  { %v2055_v7 = vld [vmem:[#allocation2 + $0x8] sm:$0xff] }
 0xf7c   :  { %2993 = vmatmul.mubr.msk.f32.vlgmr.msra.gmra.mxu0 %vm69_vm0, %v2055_v7 }
 0xf7d   :  { %3007 = vmatpush3.msra.mxu0 %v2726_v44 }
 0xf7e   :  { %3008 = vmatprep.subr.mxu0 %v2725_v45 }
 0xf7f   :  { %3009 = vmatpush3.msra.mxu0 %v2725_v45 }
 0xf80   :  { %3010 = vmatprep.subr.mxu0 %v2724_v46 }
 0xf81   :  { %3011 = vmatpush3.msra.mxu0 %v2724_v46  ;;  %v2734_v46 = vld [vmem:[%s3694_s15 + $0x1] ss:$0 sm:$0xff] }
 0xf82   :  { %3012 = vmatprep.subr.mxu0 %v2723_v47 }
 0xf83   :  { %3013 = vmatpush3.msra.mxu0 %v2723_v47 }
 0xf84   :  { %3014 = vmatprep.subr.mxu0 %v2722_v48 }
 0xf85   :  { %3015 = vmatpush3.msra.mxu0 %v2722_v48 }
 0xf86   :  { %3016 = vmatprep.subr.mxu0 %v2721_v51 }
 0xf87   :  { %3017 = vmatpush3.msra.mxu0 %v2721_v51 }
 0xf88   :  { %3018 = vmatprep.subr.mxu0 %v2720_v52 }
 0xf89   :  { %3019 = vmatpush3.msra.mxu0 %v2720_v52  ;;  %v2553_v52 = vld [vmem:[%s3696_s18 + $0x18] sm:$0xff] }
 0xf8a   :  { %3020 = vmatprep.subr.mxu0 %v2719_v53 }
 0xf8b   :  { %3021 = vmatpush3.msra.mxu0 %v2719_v53  ;;  %v2552_v53 = vld [vmem:[%s3696_s18 + $0x10] sm:$0xff] }
0x103c   :  { %v2994_v9 = vpop.f32.mrf.mxu0 }
0x103d   :  { %v2147_v10 = vadd.f32 %v2994_v9, %v2704_v8 }
0x103e   :  { %v2141_v11 = vpop.f32.mrf.mxu0 }
0x103f   :  { %v2142_v12 = vadd.f32 %v2704_v8, %v2141_v11  ;;  %v2151_v13 = vadd.f32 %v2147_v10, %v3467_v50 }
0x1041   :  { %v2159_v14 = vsel %vm69_vm0, %v2151_v13, 0.0  ;;  %v2150_v15 = vadd.f32 %v2142_v12, %v3465_v49  ;;  %v2714_v49 = vld [vmem:[%s3687_s10 + $0x38] sm:$0xff] }
0x1042   :  { %2160 = vadd.xlane.f32.xlu1 %v2159_v14  ;;  %2995 = vmatprep.subr.mxu1 %v2714_v49  ;;  %v2728_v14 = vld [vmem:[%s3692_s13 + $0x1] ss:$0 sm:$0xff] }
0x1043   :  { %v2156_v16 = vsel %vm69_vm0, %v2150_v15, 0.0  ;;  %2996 = vmatpush3.msra.mxu1 %v2714_v49 }
0x1044   :  { %2157 = vadd.xlane.f32.xlu0 %v2156_v16  ;;  %2997 = vmatprep.subr.mxu1 %v2713_v23 }
0x1045   :  { %2998 = vmatpush3.msra.mxu1 %v2713_v23 }
0x1046   :  { %2999 = vmatprep.subr.mxu1 %v2712_v24 }
0x1047   :  { %3000 = vmatpush3.msra.mxu1 %v2712_v24 }
0x1048   :  { %3001 = vmatprep.subr.mxu1 %v2711_v25 }
0x1049   :  { %3002 = vmatpush3.msra.mxu1 %v2711_v25 }
0x10cb   :  { %v2161_v54 = vpop.xlane.xlu1 %2160 }
0x10cc   :  { %v2163_v17 = vmul.f32 0.03125, %v2161_v54 }
0x10cd   :  { %v2158_v18 = vpop.xlane.xlu0 %2157 }
0x10ce   :  { %v2162_v19 = vmul.f32 0.03125, %v2158_v18  ;;  %v2165_v33 = vsub.f32 %v2151_v13, %v2163_v17 }
0x10d0   :  { %v2164_v31 = vsub.f32 %v2150_v15, %v2162_v19  ;;  %v2167_v22 = vmul.f32 %v2165_v33, %v2165_v33 }
0x10d2   :  { %v2166_v20 = vmul.f32 %v2164_v31, %v2164_v31  ;;  %v2171_v50 = vsel %vm69_vm0, %v2167_v22, 0.0 }
0x10d4   :  { %v2168_v21 = vsel %vm69_vm0, %v2166_v20, 0.0 }
0x10d5   :  { %2169 = vadd.xlane.f32.xlu0 %v2168_v21 }
0x10d9   :  { %2172 = vadd.xlane.f32.xlu0 %v2171_v50 }
0x115e   :  { %v2170_v0 = vpop.xlane.xlu0 %2169 }
0x115f   :  { %v2174_v26 = vmul.f32 0.03125, %v2170_v0 }
0x1161   :  { %v2176_v27 = vadd.f32 1e-12, %v2174_v26 }
0x1162   :  { %v2173_v28 = vpop.xlane.xlu0 %2172 }
0x1163   :  { %3103 = vrsqrt.f32 %v2176_v27  ;;  %v2175_v29 = vmul.f32 0.03125, %v2173_v28  ;;  %v2459_v27 = vld [vmem:[%s3695_s16 + $0x18] sm:$0xff]  ;;  %v2458_v28 = vld [vmem:[%s3695_s16 + $0x10] sm:$0xff] }
0x1164   :  { %3025 = vmatprep.subr.mxu1 %v2459_v27 }
0x1165   :  { %v2177_v30 = vadd.f32 1e-12, %v2175_v29  ;;  %v2457_v29 = vld [vmem:[%s3695_s16 + $0x8] sm:$0xff] }
0x1167   :  { %3105 = vrsqrt.f32 %v2177_v30  ;;  %v2456_v30 = vld [vmem:[%s3695_s16] sm:$0xff] }
0x1170   :  { %v3104_v32 = vpop.eup %3103 }
0x1171   :  { %v2180_v36 = vmul.f32 %v3104_v32, %v2164_v31 }
0x1173   :  { %v2188_v38 = vmul.f32 %v2709_v35, %v2180_v36 }
0x1174   :  { %v3106_v40 = vpop.eup %3105 }
0x1175   :  { %v2181_v39 = vmul.f32 %v3106_v40, %v2165_v33  ;;  %v3591_v41 = vadd.f32 %v2710_v37, %v2188_v38 }
0x1177   :  { %v2189_v42 = vmul.f32 %v2709_v35, %v2181_v39  ;;  %3003 = vmatprep.mubr.msk.f32.mxu1 %vm69_vm0, %v3591_v41 }
0x1179   :  { %v2197_v43 = vadd.f32 %v2710_v37, %v2189_v42 }
0x117b   :  { %3004 = vmatmul.mubr.msk.f32.vlgmr.msra.gmra.mxu1 %vm69_vm0, %v2197_v43 }
0x117c   :  { %3026 = vmatpush3.msra.mxu1 %v2459_v27 }
0x117d   :  { %3027 = vmatprep.subr.mxu1 %v2458_v28 }
0x117e   :  { %3028 = vmatpush3.msra.mxu1 %v2458_v28 }
0x117f   :  { %3029 = vmatprep.subr.mxu1 %v2457_v29 }
0x1180   :  { %3030 = vmatpush3.msra.mxu1 %v2457_v29 }
0x1181   :  { %3031 = vmatprep.subr.mxu1 %v2456_v30 }
0x1182   :  { %3032 = vmatpush3.msra.mxu1 %v2456_v30 }
0x1183   :  { %3036 = vmatprep.subr.mxu1 %v2553_v52 }
0x123b   :  { %v3005_v56 = vpop.f32.mrf.mxu1 }
0x123c   :  { %v2289_v57 = vadd.f32 %v3005_v56, %v2716_v55  ;;  %v2550_v56 = vld [vmem:[%s3696_s18] sm:$0xff] }
0x123d   :  { %v2283_v58 = vpop.f32.mrf.mxu1 }
0x123e   :  { %v2293_v59 = vmul.f32 %v2289_v57, %v2289_v57  ;;  %v2284_v60 = vadd.f32 %v2716_v55, %v2283_v58  ;;  %v2551_v55 = vld [vmem:[%s3696_s18 + $0x8] sm:$0xff] }
0x1240   :  { %v2295_v34 = vmul.f32 %v2293_v59, %v2289_v57  ;;  %v2292_v61 = vmul.f32 %v2284_v60, %v2284_v60 }
0x1242   :  { %v2297_v62 = vmul.f32 0.044715, %v2295_v34  ;;  %v2294_v63 = vmul.f32 %v2292_v61, %v2284_v60 }
0x1244   :  { %v2299_v1 = vadd.f32 %v2297_v62, %v2289_v57  ;;  %v2296_v2 = vmul.f32 0.044715, %v2294_v63  ;;  %v2738_v63 = vld [vmem:[%s3698_s19] ss:$0 sm:$0xff] }
0x1246   :  { %v2301_v3 = vmul.f32 0.7978846, %v2299_v1  ;;  %v2298_v4 = vadd.f32 %v2296_v2, %v2284_v60 }
0x1248   :  { %3107 = vtanh.f32 %v2301_v3  ;;  %v2300_v5 = vmul.f32 0.7978846, %v2298_v4 }
0x124a   :  { %3109 = vtanh.f32 %v2300_v5 }
0x1255   :  { %v3108_v6 = vpop.eup %3107 }
0x1256   :  { %v2305_v7 = vadd.f32 1.0, %v3108_v6 }
0x1257   :  { %v3110_v8 = vpop.eup %3109 }
0x1258   :  { %v2304_v9 = vadd.f32 1.0, %v3110_v8  ;;  %v2307_v10 = vmul.f32 0.5, %v2305_v7 }
0x125a   :  { %v2306_v11 = vmul.f32 0.5, %v2304_v9  ;;  %v2309_v13 = vmul.f32 %v2307_v10, %v2289_v57  ;;  %v2735_v57 = vld [vmem:[%s3697_s17] ss:$0 sm:$0xff] }
0x125c   :  { %v2308_v12 = vmul.f32 %v2306_v11, %v2284_v60 }
0x125e   :  { %3022 = vmatprep.mubr.msk.f32.mxu0 %vm1158_vm5, %v2308_v12 }
0x125f   :  { %3023 = vmatmul.mubr.msk.f32.vlgmr.msra.gmra.mxu0 %vm1158_vm5, %v2309_v13 }
0x131f   :  { %v3024_v15 = vpop.f32.mrf.mxu0 }
0x1320   :  { %v2405_v16 = vadd.f32 %v3024_v15, %v2728_v14 }
0x1321   :  { %v2399_v54 = vpop.f32.mrf.mxu0 }
0x1322   :  { %v2400_v17 = vadd.f32 %v2728_v14, %v2399_v54  ;;  %v2409_v18 = vadd.f32 %v2405_v16, %v2197_v43 }
0x1324   :  { %v2417_v19 = vsel %vm69_vm0, %v2409_v18, 0.0  ;;  %v2408_v33 = vadd.f32 %v2400_v17, %v3591_v41  ;;  %v2733_v41 = vld [vmem:[%s3693_s14 + $0x1] ss:$0 sm:$0xff] }
0x1325   :  { %2418 = vadd.xlane.f32.xlu1 %v2417_v19 }
0x1326   :  { %v2414_v31 = vsel %vm69_vm0, %v2408_v33, 0.0 }
0x1327   :  { %2415 = vadd.xlane.f32.xlu0 %v2414_v31 }
0x13ae   :  { %v2419_v20 = vpop.xlane.xlu1 %2418 }
0x13af   :  { %v2421_v21 = vmul.f32 0.03125, %v2419_v20 }
0x13b0   :  { %v2416_v22 = vpop.xlane.xlu0 %2415 }
0x13b1   :  { %v2423_v50 = vsub.f32 %v2409_v18, %v2421_v21  ;;  %v2420_v49 = vmul.f32 0.03125, %v2416_v22 }
0x13b3   :  { %v2422_v23 = vsub.f32 %v2408_v33, %v2420_v49  ;;  %v2425_v24 = vmul.f32 %v2423_v50, %v2423_v50 }
0x13b5   :  { %v2429_v25 = vsel %vm69_vm0, %v2425_v24, 0.0  ;;  %v2424_v0 = vmul.f32 %v2422_v23, %v2422_v23 }
0x13b6   :  { %2430 = vadd.xlane.f32.xlu1 %v2429_v25 }
0x13b7   :  { %v2426_v26 = vsel %vm69_vm0, %v2424_v0, 0.0 }
0x13b8   :  { %2427 = vadd.xlane.f32.xlu0 %v2426_v26 }
0x143f   :  { %v2431_v32 = vpop.xlane.xlu1 %2430 }
0x1440   :  { %v2433_v35 = vmul.f32 0.03125, %v2431_v32 }
0x1441   :  { %v2428_v36 = vpop.xlane.xlu0 %2427 }
0x1442   :  { %v2435_v37 = vadd.f32 1e-12, %v2433_v35  ;;  %v2432_v38 = vmul.f32 0.03125, %v2428_v36 }
0x1444   :  { %3111 = vrsqrt.f32 %v2435_v37  ;;  %v2434_v40 = vadd.f32 1e-12, %v2432_v38 }
0x1446   :  { %3113 = vrsqrt.f32 %v2434_v40 }
0x1451   :  { %v3112_v39 = vpop.eup %3111 }
0x1452   :  { %v2439_v42 = vmul.f32 %v3112_v39, %v2423_v50 }
0x1453   :  { %v3114_v43 = vpop.eup %3113 }
0x1454   :  { %v2438_v44 = vmul.f32 %v3114_v43, %v2422_v23  ;;  %v2447_v45 = vmul.f32 %v2733_v41, %v2439_v42 }
0x1456   :  { %v2446_v47 = vmul.f32 %v2733_v41, %v2438_v44  ;;  %v2455_v51 = vadd.f32 %v2734_v46, %v2447_v45 }
0x1458   :  { %v2454_v48 = vadd.f32 %v2734_v46, %v2446_v47 }
0x145a   :  { %3033 = vmatprep.mubr.msk.f32.mxu1 %vm69_vm0, %v2454_v48 }
0x145b   :  { %3034 = vmatmul.mubr.msk.f32.vlgmr.msra.gmra.mxu1 %vm69_vm0, %v2455_v51 }
0x145c   :  { %3037 = vmatpush3.msra.mxu1 %v2553_v52 }
0x145d   :  { %3038 = vmatprep.subr.mxu1 %v2552_v53 }
0x145e   :  { %3039 = vmatpush3.msra.mxu1 %v2552_v53 }
0x145f   :  { %3040 = vmatprep.subr.mxu1 %v2551_v55 }
0x1460   :  { %3041 = vmatpush3.msra.mxu1 %v2551_v55 }
0x1461   :  { %3042 = vmatprep.subr.mxu1 %v2550_v56 }
0x1462   :  { %3043 = vmatpush3.msra.mxu1 %v2550_v56 }
0x151b   :  { %v3035_v58 = vpop.f32.mrf.mxu1 }
0x151c   :  { %v2545_v59 = vadd.f32 %v3035_v58, %v2735_v57 }
0x151d   :  { %v2539_v60 = vpop.f32.mrf.mxu1 }
0x151e   :  { %v2540_v34 = vadd.f32 %v2735_v57, %v2539_v60 }
0x1520   :  { %3115 = vtanh.f32 %v2540_v34 }
0x1521   :  { %3117 = vtanh.f32 %v2545_v59 }
0x152d   :  { %v3116_v61 = vpop.eup %3115 }
0x152e   :  { %v3118_v62 = vpop.eup %3117  ;;  %3044 = vmatprep.mubr.msk.f32.mxu1 %vm69_vm0, %v3116_v61 }
0x152f   :  { %3045 = vmatmul.mubr.msk.f32.vlgmr.msra.gmra.mxu1 %vm69_vm0, %v3118_v62 }
0x15ef   :  { %v3046_v1 = vpop.f32.mrf.mxu1 }
0x15f0   :  { %v2639_v2 = vadd.f32 %v3046_v1, %v2738_v63 }
0x15f1   :  { %v2633_v3 = vpop.f32.mrf.mxu1 }
0x15f2   :  { %2644 = vst.msk [vmem:[%s3699_s20 + $0x8] sm:$0xff] %vm2642_vm6, %v2639_v2  ;;  %v2634_v4 = vadd.f32 %v2738_v63, %v2633_v3 }
0x15f4   :  { %2643 = vst.msk [vmem:[%s3699_s20] sm:$0xff] %vm2642_vm6, %v2634_v4 }

</bundles_post_ra>
